<compile_context>
chip_gen: v7x
topology: tpu7x:2x2x1
jax: 0.10.0
libtpu: 0.0.40
codegen_flags: <defaults>
</compile_context>

<pallas_src>
import functools
import math

import jax
import jax.numpy as jnp
from jax import lax
from jax.experimental import pallas as pl
from jax.experimental.pallas import tpu as pltpu


# ----------------------------- TPU-generation config -----------------------------

def _tpu_generation():
    try:
        kind = jax.devices()[0].device_kind.lower()
        for g in (7, 6, 5, 4, 3, 2):
            if "v%d" % g in kind:
                return g
    except Exception:
        pass
    return 6


_GEN = _tpu_generation()
if _GEN >= 7:
    VMEM_LIMIT = 48 * 1024 * 1024        # v7x: 64 MiB physical VMEM
elif _GEN >= 5:
    VMEM_LIMIT = 96 * 1024 * 1024        # v5e/v6e: 128 MiB physical VMEM
elif _GEN == 4:
    VMEM_LIMIT = 64 * 1024 * 1024
else:
    VMEM_LIMIT = 16 * 1024 * 1024
ROW_TILE = 512 if _GEN >= 7 else (1024 if _GEN >= 5 else 512)
DW_DTYPE = jnp.bfloat16 if _GEN >= 6 else jnp.float32   # depthwise tap/weight dtype
DW_BUDGET = VMEM_LIMIT // 2


def _pad128(c):
    return ((c + 127) // 128) * 128


def _round_up(x, m):
    return ((x + m - 1) // m) * m


def _zpad(a, shape):
    return jnp.pad(a, [(0, t - s) for s, t in zip(a.shape, shape)])


def _cparams(ndims):
    return pltpu.CompilerParams(
        dimension_semantics=("parallel",) * ndims,
        vmem_limit_bytes=VMEM_LIMIT)


# ------------------------- in-kernel math helpers -------------------------

def _sigmoid(x):
    xc = jnp.clip(x, -30.0, 30.0)
    return pl.reciprocal(1.0 + jnp.exp(-xc), approx=True)


def _silu(x):
    return x * _sigmoid(x)


# ----------------------------- Pallas kernels -----------------------------

def linear_kernel(x_ref, w_ref, b_ref, o_ref, *, act):
    # y = x @ w + bias  [+ SiLU]  (BN scale pre-folded into w); one row tile per step
    y = jnp.dot(x_ref[...], w_ref[...], preferred_element_type=jnp.float32)
    y = y + b_ref[...]
    if act:
        y = _silu(y)
    o_ref[...] = y.astype(o_ref.dtype)


def dw_kernel(ep_ref, wdw_ref, bdw_ref, h_ref, sum_ref, *,
              k, stride, ho_s, wo, ho, ho_pad):
    # One (image, H-stripe) per grid step.
    # ep_ref : (pcount, ho_s+halo, wq, C) parity-decomposed zero-padded stripe
    # h_ref  : (ho_s*wo, C) dw+BN+SiLU output (flattened rows)
    # sum_ref: (1, C) partial channel sums for the SE global pool
    c = ep_ref.shape[-1]
    wdw = wdw_ref[...]                                   # (k*k, 1, C)
    acc = jnp.zeros((ho_s, wo, c), jnp.float32)
    for kh in range(k):
        for kw in range(k):
            pi = (kh % stride) * stride + (kw % stride)
            r0 = kh // stride
            c0 = kw // stride
            tap = ep_ref[pi, r0:r0 + ho_s, c0:c0 + wo, :]
            acc = acc + tap * wdw[kh * k + kw]           # bf16 mul (>=v6), f32 acc
    h = _silu(acc + bdw_ref[...])                        # depthwise BN (+ SiLU)

    if ho_pad != ho:                                     # mask garbage rows of last stripe
        si = pl.program_id(1)
        rows = lax.broadcasted_iota(jnp.int32, (ho_s, 1, 1), 0)
        hsum_src = jnp.where((si * ho_s + rows) < ho, h, 0.0)
    else:
        hsum_src = h
    ps = jnp.sum(jnp.sum(hsum_src, axis=0), axis=0, keepdims=True)   # (1, C)
    sum_ref[...] = ps
    h_ref[...] = h.reshape(ho_s * wo, c).astype(h_ref.dtype)


def se_gate_kernel(sum_ref, w1_ref, b1_ref, w2_ref, b2_ref, o_ref, *, inv_area):
    # Whole batch in one step: mean pool from stripe partial sums -> fc1 -> SiLU
    # -> fc2 -> sigmoid gate.
    s = jnp.sum(sum_ref[...], axis=1)                    # (N, 1, C)
    pooled = s[:, 0, :] * inv_area                       # (N, C)
    s1 = jnp.dot(pooled.astype(jnp.bfloat16), w1_ref[...],
                 preferred_element_type=jnp.float32) + b1_ref[...]
    s1 = _silu(s1)
    s2 = jnp.dot(s1.astype(jnp.bfloat16), w2_ref[...],
                 preferred_element_type=jnp.float32) + b2_ref[...]
    gate = _sigmoid(s2)                                  # (N, C)
    o_ref[...] = gate[:, None, :].astype(o_ref.dtype)


def project_kernel(h_ref, g_ref, w_ref, b_ref, *rest, has_res):
    # y = ((h * gate) @ w_pr) + bias  [+ residual]   (one (image, stripe) per step)
    if has_res:
        res_ref, o_ref = rest
    else:
        (o_ref,) = rest
    xg = h_ref[...] * g_ref[...]                         # bf16, SE gate fused here
    y = jnp.dot(xg, w_ref[...], preferred_element_type=jnp.float32) + b_ref[...]
    if has_res:
        # TODO(synk): StochasticDepth is identity in eval mode.
        y = y + res_ref[...].astype(jnp.float32)
    o_ref[...] = y.astype(o_ref.dtype)


def classifier_kernel(x_ref, w1_ref, b1_ref, w2_ref, b2_ref, o_ref, *, hw):
    # global avg pool over HW, then Linear(1792,1000) and Linear(1000,nc), M = batch.
    x = x_ref[...].astype(jnp.float32)                   # (N, HW, C)
    pooled = jnp.sum(x, axis=1) * (1.0 / float(hw))      # (N, C)
    # TODO(synk): Dropout(p=0.4) before Linear(1792,1000) is identity in eval mode.
    z1 = jnp.dot(pooled.astype(jnp.bfloat16), w1_ref[...],
                 preferred_element_type=jnp.float32) + b1_ref[...]
    z2 = jnp.dot(z1.astype(jnp.bfloat16), w2_ref[...],
                 preferred_element_type=jnp.float32) + b2_ref[...]
    o_ref[...] = z2


# ----------------------------- jitted wrappers -----------------------------

@functools.partial(jax.jit, static_argnames=("act",))
def _linear(x2d, w, bias, *, act):
    r, kdim = x2d.shape
    n_out = w.shape[1]
    tile = ROW_TILE if r >= ROW_TILE else _round_up(r, 8)
    rpad = _round_up(r, tile)
    if rpad != r:
        x2d = jnp.pad(x2d, ((0, rpad - r), (0, 0)))
    out = pl.pallas_call(
        functools.partial(linear_kernel, act=act),
        out_shape=jax.ShapeDtypeStruct((rpad, n_out), jnp.bfloat16),
        grid=(rpad // tile,),
        in_specs=[
            pl.BlockSpec((tile, kdim), lambda i: (i, 0)),
            pl.BlockSpec((kdim, n_out), lambda i: (0, 0)),
            pl.BlockSpec((1, n_out), lambda i: (0, 0)),
        ],
        out_specs=pl.BlockSpec((tile, n_out), lambda i: (i, 0)),
        compiler_params=_cparams(1),
    )(x2d, w, bias)
    return out[:r] if rpad != r else out


def _dw_plan(n, h, w, c, k, s):
    p = (k - 1) // 2
    ho = (h + 2 * p - k) // s + 1
    wo = (w + 2 * p - k) // s + 1
    halo = (k - 1) // s
    hq = halo + ho + 1
    wq = halo + wo + 1
    pcount = s * s if s > 1 else 1
    n_stripes = 2 if (_GEN >= 7 and n < 2 and ho >= 2) else 1
    while True:
        ho_s = -(-ho // n_stripes)
        need = (2 * pcount * (ho_s + halo) * wq * c * 2   # ep blocks (bf16, dbuf)
                + 2 * ho_s * wo * c * 2                   # h output blocks
                + ho_s * wo * c * 4)                      # f32 accumulator
        if need <= DW_BUDGET or ho_s == 1:
            break
        n_stripes += 1
    n_stripes = -(-ho // ho_s)
    return dict(p=p, ho=ho, wo=wo, halo=halo, hq=hq, wq=wq, pcount=pcount,
                n_stripes=n_stripes, ho_s=ho_s, ho_pad=n_stripes * ho_s)


@functools.partial(jax.jit, static_argnames=("k", "stride"))
def _dw(e, w_dw, b_dw, *, k, stride):
    n, h, w, c = e.shape
    s = stride
    pl_ = _dw_plan(n, h, w, c, k, s)
    p, ho, wo = pl_['p'], pl_['ho'], pl_['wo']
    halo, hq, wq = pl_['halo'], pl_['hq'], pl_['wq']
    pcount, n_stripes, ho_s = pl_['pcount'], pl_['n_stripes'], pl_['ho_s']
    ho_pad = pl_['ho_pad']

    # zero padding of the POST-activation expanded map == the depthwise conv's
    # own zero padding, so no mask is needed for the conv itself.
    ep = jnp.pad(e, ((0, 0), (p, s * hq - h - p), (p, s * wq - w - p), (0, 0)))
    if s == 1:
        stack = ep[:, None]                               # (n, 1, hq, wq, c)
    else:
        parts = [ep[:, a::s, b::s, :][:, :hq, :wq, :]
                 for a in range(s) for b in range(s)]
        stack = jnp.stack(parts, axis=1)                  # (n, s*s, hq, wq, c)

    h_need = ho_pad + halo
    if h_need > stack.shape[2]:
        stack = jnp.pad(stack, ((0, 0), (0, 0), (0, h_need - stack.shape[2]),
                                (0, 0), (0, 0)))
    hs_in = ho_s + halo
    stripes = jnp.concatenate(
        [stack[:, None, :, i * ho_s: i * ho_s + hs_in] for i in range(n_stripes)],
        axis=1)                                           # (n, S, pcount, hs_in, wq, c)
    rs = ho_s * wo
    kernel = functools.partial(dw_kernel, k=k, stride=s, ho_s=ho_s, wo=wo,
                               ho=ho, ho_pad=ho_pad)
    return pl.pallas_call(
        kernel,
        out_shape=(jax.ShapeDtypeStruct((n, n_stripes, rs, c), jnp.bfloat16),
                   jax.ShapeDtypeStruct((n, n_stripes, 1, c), jnp.float32)),
        grid=(n, n_stripes),
        in_specs=[
            pl.BlockSpec((None, None, pcount, hs_in, wq, c),
                         lambda i, j: (i, j, 0, 0, 0, 0)),
            pl.BlockSpec((k * k, 1, c), lambda i, j: (0, 0, 0)),
            pl.BlockSpec((1, c), lambda i, j: (0, 0)),
        ],
        out_specs=(pl.BlockSpec((None, None, rs, c), lambda i, j: (i, j, 0, 0)),
                   pl.BlockSpec((None, None, 1, c), lambda i, j: (i, j, 0, 0))),
        compiler_params=_cparams(2),
    )(stripes, w_dw, b_dw)


@functools.partial(jax.jit, static_argnames=("inv_area",))
def _se_gate(sums, w1, b1, w2, b2, *, inv_area):
    n, n_str, _, c = sums.shape
    csq = w1.shape[1]
    kernel = functools.partial(se_gate_kernel, inv_area=inv_area)
    return pl.pallas_call(
        kernel,
        out_shape=jax.ShapeDtypeStruct((n, 1, c), jnp.bfloat16),
        grid=(1,),
        in_specs=[
            pl.BlockSpec((n, n_str, 1, c), lambda i: (0, 0, 0, 0)),
            pl.BlockSpec((c, csq), lambda i: (0, 0)),
            pl.BlockSpec((1, csq), lambda i: (0, 0)),
            pl.BlockSpec((csq, c), lambda i: (0, 0)),
            pl.BlockSpec((1, c), lambda i: (0, 0)),
        ],
        out_specs=pl.BlockSpec((n, 1, c), lambda i: (0, 0, 0)),
        compiler_params=_cparams(1),
    )(sums, w1, b1, w2, b2)


@functools.partial(jax.jit, static_argnames=("has_res",))
def _project(h5, gate, w, bias, res5, *, has_res):
    n, n_str, rs, cexp = h5.shape
    cout = w.shape[1]
    kernel = functools.partial(project_kernel, has_res=has_res)
    in_specs = [
        pl.BlockSpec((None, None, rs, cexp), lambda i, j: (i, j, 0, 0)),
        pl.BlockSpec((None, 1, cexp), lambda i, j: (i, 0, 0)),
        pl.BlockSpec((cexp, cout), lambda i, j: (0, 0)),
        pl.BlockSpec((1, cout), lambda i, j: (0, 0)),
    ]
    args = [h5, gate, w, bias]
    if has_res:
        in_specs.append(pl.BlockSpec((None, None, rs, cout),
                                     lambda i, j: (i, j, 0, 0)))
        args.append(res5)
    return pl.pallas_call(
        kernel,
        out_shape=jax.ShapeDtypeStruct((n, n_str, rs, cout), jnp.bfloat16),
        grid=(n, n_str),
        in_specs=in_specs,
        out_specs=pl.BlockSpec((None, None, rs, cout), lambda i, j: (i, j, 0, 0)),
        compiler_params=_cparams(2),
    )(*args)


@jax.jit
def _classifier(x3d, w1, b1, w2, b2):
    n, hw, cin = x3d.shape
    c1 = w1.shape[1]
    cf = w2.shape[1]
    kernel = functools.partial(classifier_kernel, hw=hw)
    return pl.pallas_call(
        kernel,
        out_shape=jax.ShapeDtypeStruct((n, cf), jnp.float32),
        grid=(1,),
        in_specs=[
            pl.BlockSpec((n, hw, cin), lambda i: (0, 0, 0)),
            pl.BlockSpec((cin, c1), lambda i: (0, 0)),
            pl.BlockSpec((1, c1), lambda i: (0, 0)),
            pl.BlockSpec((c1, cf), lambda i: (0, 0)),
            pl.BlockSpec((1, cf), lambda i: (0, 0)),
        ],
        out_specs=pl.BlockSpec((n, cf), lambda i: (0, 0)),
        compiler_params=_cparams(1),
    )(x3d, w1, b1, w2, b2)


# ----------------------------- model config / params -----------------------------

def _make_divisible(v, divisor=8, min_value=None):
    if min_value is None:
        min_value = divisor
    new_v = max(min_value, int(v + divisor / 2) // divisor * divisor)
    if new_v < 0.9 * v:
        new_v += divisor
    return new_v


def efficientnet_b4_config():
    width_mult, depth_mult = 1.4, 1.8
    base = [
        (1, 3, 1, 32, 16, 1),
        (6, 3, 2, 16, 24, 2),
        (6, 5, 2, 24, 40, 2),
        (6, 3, 2, 40, 80, 3),
        (6, 5, 1, 80, 112, 3),
        (6, 5, 2, 112, 192, 4),
        (6, 3, 1, 192, 320, 1),
    ]
    cfg = []
    for (e, k, s, cin, cout, nl) in base:
        cfg.append(dict(expand=e, k=k, stride=s,
                        cin=_make_divisible(cin * width_mult),
                        cout=_make_divisible(cout * width_mult),
                        layers=int(math.ceil(nl * depth_mult))))
    return cfg


def init_params(key, num_classes=2):
    keys = iter(jax.random.split(key, 4096))

    def nrm(shape, std):
        return std * jax.random.normal(next(keys), shape, jnp.float32)

    def bn(c):  # folded eval-mode BatchNorm (scale, bias), unpadded
        gamma = 1.0 + 0.1 * jax.random.normal(next(keys), (1, c), jnp.float32)
        beta = 0.1 * jax.random.normal(next(keys), (1, c), jnp.float32)
        mean = 0.1 * jax.random.normal(next(keys), (1, c), jnp.float32)
        var = 1.0 + 0.1 * jnp.abs(jax.random.normal(next(keys), (1, c), jnp.float32))
        scale = gamma / jnp.sqrt(var + 1e-5)
        bias = beta - mean * scale
        return scale, bias

    cfg = efficientnet_b4_config()
    params = {'num_classes': num_classes}

    stem_c = cfg[0]['cin']                                   # 48
    stem_cp = _pad128(stem_c)
    w = nrm((27, stem_c), math.sqrt(2.0 / 27))
    sc, bi = bn(stem_c)
    params['stem_w'] = _zpad(w * sc, (27, stem_cp)).astype(jnp.bfloat16)
    params['stem_b'] = _zpad(bi, (1, stem_cp))

    blocks = []
    for stage in cfg:
        for i in range(stage['layers']):
            cin = stage['cin'] if i == 0 else stage['cout']
            cout = stage['cout']
            stride = stage['stride'] if i == 0 else 1
            k = stage['k']
            cexp = cin * stage['expand']
            csq = max(1, cin // 4)
            cin_p, cout_p = _pad128(cin), _pad128(cout)
            cexp_p, csq_p = _pad128(cexp), _pad128(csq)
            has_expand = stage['expand'] != 1
            has_res = (stride == 1 and cin == cout)
            blk = dict(k=k, stride=stride, has_expand=has_expand, has_res=has_res)
            if has_expand:
                w = nrm((cin, cexp), math.sqrt(2.0 / cin))
                sc, bi = bn(cexp)
                blk['w_exp'] = _zpad(w * sc, (cin_p, cexp_p)).astype(jnp.bfloat16)
                blk['b_exp'] = _zpad(bi, (1, cexp_p))
            w = nrm((k * k, 1, cexp), math.sqrt(2.0 / (k * k)))
            sc, bi = bn(cexp)
            blk['w_dw'] = _zpad(w * sc, (k * k, 1, cexp_p)).astype(DW_DTYPE)
            blk['b_dw'] = _zpad(bi, (1, cexp_p))
            blk['w_se1'] = _zpad(nrm((cexp, csq), math.sqrt(2.0 / cexp)),
                                 (cexp_p, csq_p)).astype(jnp.bfloat16)
            blk['b_se1'] = _zpad(nrm((1, csq), 0.01), (1, csq_p))
            blk['w_se2'] = _zpad(nrm((csq, cexp), math.sqrt(2.0 / csq)),
                                 (csq_p, cexp_p)).astype(jnp.bfloat16)
            blk['b_se2'] = _zpad(nrm((1, cexp), 0.01), (1, cexp_p))
            w = nrm((cexp, cout), math.sqrt(2.0 / cexp))
            sc, bi = bn(cout)
            blk['w_pr'] = _zpad(w * sc, (cexp_p, cout_p)).astype(jnp.bfloat16)
            blk['b_pr'] = _zpad(bi, (1, cout_p))
            blocks.append(blk)
    params['blocks'] = blocks

    head_in = cfg[-1]['cout']                                # 448
    head_in_p = _pad128(head_in)                             # 512
    head_out = 4 * head_in                                   # 1792
    head_out_p = _pad128(head_out)
    w = nrm((head_in, head_out), math.sqrt(2.0 / head_in))
    sc, bi = bn(head_out)
    params['head_w'] = _zpad(w * sc, (head_in_p, head_out_p)).astype(jnp.bfloat16)
    params['head_b'] = _zpad(bi, (1, head_out_p))

    fc1_p = _pad128(1000)
    params['fc1_w'] = _zpad(nrm((head_out, 1000), math.sqrt(1.0 / head_out)),
                            (head_out_p, fc1_p)).astype(jnp.bfloat16)
    params['fc1_b'] = _zpad(nrm((1, 1000), 0.01), (1, fc1_p))
    fc2_p = _pad128(num_classes)
    params['fc2_w'] = _zpad(nrm((1000, num_classes), math.sqrt(1.0 / 1000)),
                            (fc1_p, fc2_p)).astype(jnp.bfloat16)
    params['fc2_b'] = _zpad(nrm((1, num_classes), 0.01), (1, fc2_p))
    return params


# ----------------------------- forward -----------------------------

def efficientnet_b4_forward(params, x_nchw):
    x = jnp.transpose(x_nchw, (0, 2, 3, 1)).astype(jnp.float32)   # NCHW -> NHWC
    n, h, w, cin = x.shape

    # stem: 3x3 conv stride 2 + BN + SiLU (im2col of the 3-channel input)
    k, s, p = 3, 2, 1
    ho = (h + 2 * p - k) // s + 1
    wo = (w + 2 * p - k) // s + 1
    xp = jnp.pad(x, ((0, 0), (p, p), (p, p), (0, 0)))
    cols = [xp[:, kh:kh + s * (ho - 1) + 1:s, kw:kw + s * (wo - 1) + 1:s, :]
            for kh in range(k) for kw in range(k)]
    im2col = jnp.concatenate(cols, axis=-1).reshape(n * ho * wo, k * k * cin)
    h2d = _linear(im2col.astype(jnp.bfloat16), params['stem_w'],
                  params['stem_b'], act=True)
    xact = h2d.reshape(n, ho, wo, -1)

    # 32 MBConv blocks
    for blk in params['blocks']:
        nb, hh, ww, c = xact.shape
        if blk['has_expand']:
            e2d = _linear(xact.reshape(nb * hh * ww, c), blk['w_exp'],
                          blk['b_exp'], act=True)
            e = e2d.reshape(nb, hh, ww, -1)
        else:
            e = xact
        plan = _dw_plan(nb, hh, ww, e.shape[-1], blk['k'], blk['stride'])
        h5, sums = _dw(e, blk['w_dw'], blk['b_dw'],
                       k=blk['k'], stride=blk['stride'])
        gate = _se_gate(sums, blk['w_se1'], blk['b_se1'],
                        blk['w_se2'], blk['b_se2'],
                        inv_area=1.0 / float(plan['ho'] * plan['wo']))
        res5 = None
        if blk['has_res']:
            resid = xact
            if plan['ho_pad'] != plan['ho']:
                resid = jnp.pad(resid, ((0, 0), (0, plan['ho_pad'] - plan['ho']),
                                        (0, 0), (0, 0)))
            res5 = resid.reshape(nb, plan['n_stripes'],
                                 plan['ho_s'] * plan['wo'], resid.shape[-1])
        out5 = _project(h5, gate, blk['w_pr'], blk['b_pr'], res5,
                        has_res=blk['has_res'])
        xact = out5.reshape(nb, plan['ho_pad'], plan['wo'], -1)
        if plan['ho_pad'] != plan['ho']:
            xact = xact[:, :plan['ho'], :, :]

    # head: 1x1 conv + BN + SiLU via the shared row-tiled matmul, then a
    # batch-wide pool + Linear(1792,1000) + Linear(1000,num_classes) kernel.
    nb, hh, ww, c = xact.shape
    y2d = _linear(xact.reshape(nb * hh * ww, c), params['head_w'],
                  params['head_b'], act=True)
    logits = _classifier(y2d.reshape(nb, hh * ww, -1),
                         params['fc1_w'], params['fc1_b'],
                         params['fc2_w'], params['fc2_b'])
    return logits[:, :params['num_classes']]


if __name__ == "__main__":
    key = jax.random.PRNGKey(0)
    pkey, xkey = jax.random.split(key)
    params = init_params(pkey, num_classes=2)
    # small PyTorch-style NCHW input (batch=2, 3 channels, 32x32)
    x = jax.random.normal(xkey, (2, 3, 32, 32), jnp.float32)
    y = efficientnet_b4_forward(params, x)
    jax.block_until_ready(y)
    assert y.shape == (2, 2) and bool(jnp.all(jnp.isfinite(y)))
    print("KERNEL_OK")
</pallas_src>

<mosaic_0001>
module attributes {stable_mosaic.version = 11 : i64} {
  func.func @linear_kernel(%arg0: i32, %arg1: memref<512x27xbf16, #tpu.memory_space<vmem>>, %arg2: memref<27x128xbf16, #tpu.memory_space<vmem>>, %arg3: memref<1x128xf32, #tpu.memory_space<vmem>>, %arg4: memref<512x128xbf16, #tpu.memory_space<vmem>>) attributes {dimension_semantics = [#tpu.dimension_semantics<parallel>], iteration_bounds = array<i64: 1>, scalar_prefetch = 0 : i64, scratch_operands = 0 : i64, tpu.core_type = #tpu.core_type<tc>, window_params = [{transform_indices = @transform_0, window_bounds = array<i64: 512, 27>}, {pipeline_mode = #tpu.pipeline_mode<synchronous>, transform_indices = @transform_1, window_bounds = array<i64: 27, 128>}, {pipeline_mode = #tpu.pipeline_mode<synchronous>, transform_indices = @transform_2, window_bounds = array<i64: 1, 128>}, {transform_indices = @transform_3, window_bounds = array<i64: 512, 128>}]} {
    %c0 = arith.constant 0 : index
    %c0_0 = arith.constant 0 : index
    %0 = vector.load %arg1[%c0, %c0_0] : memref<512x27xbf16, #tpu.memory_space<vmem>>, vector<512x27xbf16>
    %c0_1 = arith.constant 0 : index
    %c0_2 = arith.constant 0 : index
    %1 = vector.load %arg2[%c0_1, %c0_2] : memref<27x128xbf16, #tpu.memory_space<vmem>>, vector<27x128xbf16>
    %cst = arith.constant dense<0.000000e+00> : vector<512x128xf32>
    %2 = tpu.matmul %0, %1, %cst {dimension_numbers = #tpu.dot_dimension_numbers<[1], [0], [0], [1], [0, 0, 1, 1], [], []>} : vector<512x27xbf16>, vector<27x128xbf16>, vector<512x128xf32> -> vector<512x128xf32>
    %c0_3 = arith.constant 0 : index
    %c0_4 = arith.constant 0 : index
    %3 = vector.load %arg3[%c0_3, %c0_4] : memref<1x128xf32, #tpu.memory_space<vmem>>, vector<1x128xf32>
    %4 = vector.broadcast %3 : vector<1x128xf32> to vector<512x128xf32>
    %5 = arith.addf %2, %4 : vector<512x128xf32>
    %cst_5 = arith.constant -3.000000e+01 : f32
    %cst_6 = arith.constant 3.000000e+01 : f32
    %6 = vector.broadcast %cst_5 : f32 to vector<512x128xf32>
    %7 = arith.maximumf %6, %5 : vector<512x128xf32>
    %8 = vector.broadcast %cst_6 : f32 to vector<512x128xf32>
    %9 = arith.minimumf %8, %7 : vector<512x128xf32>
    %cst_7 = arith.constant 0.000000e+00 : f32
    %10 = vector.broadcast %cst_7 : f32 to vector<512x128xf32>
    %11 = arith.subf %10, %9 : vector<512x128xf32>
    %12 = math.exp %11 : vector<512x128xf32>
    %cst_8 = arith.constant 1.000000e+00 : f32
    %13 = vector.broadcast %cst_8 : f32 to vector<512x128xf32>
    %14 = arith.addf %13, %12 : vector<512x128xf32>
    %15 = tpu.reciprocal %14 {approx = true} : vector<512x128xf32> -> vector<512x128xf32>
    %16 = arith.mulf %5, %15 : vector<512x128xf32>
    %17 = arith.truncf %16 : vector<512x128xf32> to vector<512x128xbf16>
    %c0_9 = arith.constant 0 : index
    %c0_10 = arith.constant 0 : index
    %18 = vector.load %arg4[%c0_9, %c0_10] : memref<512x128xbf16, #tpu.memory_space<vmem>>, vector<512x128xbf16>
    tpu.vector_store %arg4[%c0_9, %c0_10], %17 {strides = array<i32>} : memref<512x128xbf16, #tpu.memory_space<vmem>>, vector<512x128xbf16>,
    return
  }
  func.func @transform_0(%arg0: i32) -> (i32, i32) {
    %c0_i32 = arith.constant 0 : i32
    %c0_i32_0 = arith.constant 0 : i32
    return %arg0, %c0_i32 : i32, i32
  }
  func.func @transform_1(%arg0: i32) -> (i32, i32) {
    %c0_i32 = arith.constant 0 : i32
    %c0_i32_0 = arith.constant 0 : i32
    %c0_i32_1 = arith.constant 0 : i32
    return %c0_i32, %c0_i32_0 : i32, i32
  }
  func.func @transform_2(%arg0: i32) -> (i32, i32) {
    %c0_i32 = arith.constant 0 : i32
    %c0_i32_0 = arith.constant 0 : i32
    %c0_i32_1 = arith.constant 0 : i32
    return %c0_i32, %c0_i32_0 : i32, i32
  }
  func.func @transform_3(%arg0: i32) -> (i32, i32) {
    %c0_i32 = arith.constant 0 : i32
    %c0_i32_0 = arith.constant 0 : i32
    return %arg0, %c0_i32 : i32, i32
  }
}

</mosaic_0001>

<bundles_post_ra>
// kernel: _linear.1
= control target key start
LH: loop header
LB: loop body
LE: loop exit
PB: predicated region body
PF: predicated region fallthrough
CT: control target
= control target key end

     0   :  { %8 = vsyncpa [#allocation3], 0  ;;  %s3125_s0 = inlined_call_operand.hbm [shape: bf16[512,27], index: 0, kind: input, shape index: {}]   ;;  %s3126_s1 = inlined_call_operand.hbm [shape: bf16[27,128], index: 1, kind: input, shape index: {}]   ;;  %s3127_s2 = inlined_call_operand.hbm [shape: f32[1,128], index: 2, kind: input, shape index: {}]   ;;  %s3128_s3 = inlined_call_operand.hbm [shape: bf16[512,128], index: 3, kind: output, shape index: {}]  }
   0x1   :  { %9 = vsyncpa [#allocation6], 0 }
   0x2   :  { %10 = vsyncpa [#allocation4], 0  ;;  %s2492_s12 = smov [#allocation5]   ;;  %s2493_s14 = smov [#allocation2]  }
   0x3   :  { %s28_s13 = sshll.u32 %s2492_s12, 4  ;;  %s16_s15 = sshll.u32 %s2493_s14, 4  ;;  %s29_s13 = int_to_ptr.vmem [resolvable:$true] %s28_s13  ;;  %s2519_s15 = int_to_ptr.vmem [resolvable:$true] %s16_s15 }
   0x4   :  { %s2398_s18 = scalar_lea.hbm %s3126_s1, 256 }
   0x5   :  { %p2399_p0 = scmp.ne.s32.totalorder %s3126_s1, %s2398_s18  ;;  %p2402_p1 = scmp.lt.u32.totalorder %s2398_s18, %s3126_s1 }
   0x7   :  { %p2404_p2 = pnand %p2402_p1, %p2399_p0 }
   0x9   :  { %2407 = shalt.err (!%p2404_p2)
}
   0xa   :  { %s2408_s23 = scalar_lea.vmem %s29_s13, 256  ;;  %p2413_p4 = scmp.lt.s32.totalorder %s29_s13, %s29_s13 }
   0xb   :  { %p2409_p3 = scmp.ne.s32.totalorder %s29_s13, %s2408_s23  ;;  %p2414_p5 = scmp.lt.s32.totalorder %s2408_s23, %s2408_s23 }
   0xd   :  { %p2415_p6 = por %p2414_p5, %p2413_p4 }
   0xf   :  { %p2416_p7 = pnand %p2415_p6, %p2409_p3 }
  0x11   :  { %2419 = shalt.err (!%p2416_p7)
}
  0x12   :  { %s2494_s24 = smov 64   ;;  %s2495_s25 = smov 4  }
  0x13   :  { %34 = dma.hbm_to_vmem [thread:$0]  %s3126_s1, 256, %s29_s13, [#allocation6], %s2494_s24, %s2494_s24, %s2495_s25  }
  0x14   :  { %s2420_s30 = scalar_lea.hbm %s3125_s0, 4096 }
  0x15   :  { %p2421_p8 = scmp.ne.s32.totalorder %s3125_s0, %s2420_s30  ;;  %p2424_p9 = scmp.lt.u32.totalorder %s2420_s30, %s3125_s0 }
  0x17   :  { %p2426_p10 = pnand %p2424_p9, %p2421_p8 }
  0x19   :  { %2429 = shalt.err (!%p2426_p10)
}
  0x1a   :  { %s2430_s8 = scalar_lea.vmem %s2519_s15, 4096  ;;  %p2435_p12 = scmp.lt.s32.totalorder %s2519_s15, %s2519_s15 }
  0x1b   :  { %p2431_p11 = scmp.ne.s32.totalorder %s2519_s15, %s2430_s8  ;;  %p2436_p13 = scmp.lt.s32.totalorder %s2430_s8, %s2430_s8 }
  0x1d   :  { %p2437_p0 = por %p2436_p13, %p2435_p12 }
  0x1f   :  { %p2438_p1 = pnand %p2437_p0, %p2431_p11 }
  0x21   :  { %2441 = shalt.err (!%p2438_p1)
}
  0x22   :  { %22 = dma.hbm_to_vmem [thread:$0]  %s3125_s0, 4096, %s2519_s15, [#allocation3], %s2494_s24, %s2494_s24, %s2495_s25  }
  0x23   :  { %s2496_s10 = smov [#allocation7]   ;;  %s2442_s14 = scalar_lea.hbm %s3127_s2, 16 }
  0x24   :  { %s41_s11 = sshll.u32 %s2496_s10, 4  ;;  %p2443_p2 = scmp.ne.s32.totalorder %s3127_s2, %s2442_s14  ;;  %s42_s11 = int_to_ptr.vmem [resolvable:$true] %s41_s11 }
  0x25   :  { %p2446_p3 = scmp.lt.u32.totalorder %s2442_s14, %s3127_s2 }
  0x27   :  { %p2448_p4 = pnand %p2446_p3, %p2443_p2 }
  0x29   :  { %2451 = shalt.err (!%p2448_p4)
}
  0x2a   :  { %s2452_s20 = scalar_lea.vmem %s42_s11, 16  ;;  %s2456_s0 = scalar_lea.vmem %s42_s11, 32 }
  0x2b   :  { %p2453_p5 = scmp.ne.s32.totalorder %s42_s11, %s2452_s20  ;;  %p2457_p6 = scmp.lt.s32.totalorder %s42_s11, %s42_s11 }
  0x2c   :  { %p2458_p7 = scmp.lt.s32.totalorder %s2456_s0, %s2452_s20 }
  0x2e   :  { %p2459_p8 = por %p2458_p7, %p2457_p6 }
  0x30   :  { %p2460_p9 = pnand %p2459_p8, %p2453_p5 }
  0x32   :  { %2463 = shalt.err (!%p2460_p9)
}
  0x33   :  { %44 = dma.hbm_to_vmem [thread:$0]  %s3127_s2, 16, %s42_s11, [#allocation6]  }
  0x34   :  { %2486 = dma.done.wait [#allocation3], 4096  }
  0x35   :  { %2487 = vsyncadd [#allocation3], 4294963200 }
  0x36   :  { %2488 = dma.done.wait [#allocation6], 272  }
  0x37   :  { %2489 = vsyncadd [#allocation6], 4294967024  ;;  %vm398_vm0 = vcmask 1044480   ;;  %vm399_vm1 = vcmask 1045504   ;;  %v2497_v0 = vmov 65535   ;;  %vm301_vm2 = vcmask 220160  }
  0x38   :  { %v400_v1 = vsel %vm398_vm0, 4294967295, %v2497_v0  ;;  %v2107_v2 = vld [vmem:[#allocation5] sm:$0xff]   ;;  %v2108_v4 = vld [vmem:[#allocation5 + $0x8] sm:$0x3f]   ;;  %v2113_v10 = vld [vmem:[#allocation2 + $0x10] sm:$0xff]   ;;  %s2498_s2 = smov [#allocation8]  }
  0x39   :  { %v401_v3 = vsel %vm399_vm1, %v400_v1, 0  ;;  %2028 = vmatprep.subr.bf16.mxu0 %v2107_v2  ;;  %2096 = vmatprep.subr.bf16.mxu1 %v2107_v2  ;;  %v2109_v5 = vld [vmem:[#allocation2] sm:$0xff]   ;;  %v2111_v8 = vld [vmem:[#allocation2 + $0x8] sm:$0xff]   ;;  %v2114_v11 = vld [vmem:[#allocation2 + $0x90] sm:$0xff]   ;;  %s1531_s22 = sshll.u32 %s2498_s2, 4  ;;  %s1532_s22 = int_to_ptr.vmem [resolvable:$true] %s1531_s22 }
  0x3a   :  { %2029 = vmatpush3.bf16.msra.mxu0 %v2107_v2  ;;  %2098 = vmatpush3.bf16.msra.mxu1 %v2107_v2  ;;  %v403_v6 = vand.u32 %v2108_v4, %v401_v3  ;;  %v2110_v7 = vld [vmem:[#allocation2 + $0x80] sm:$0xff]   ;;  %v2112_v9 = vld [vmem:[#allocation2 + $0x88] sm:$0xff]   ;;  %v2115_v12 = vld [vmem:[#allocation2 + $0x18] sm:$0xff]   ;;  %s2464_s23 = scalar_lea.vmem %s1532_s22, 4096  ;;  %p2469_p11 = scmp.lt.s32.totalorder %s1532_s22, %s1532_s22 }
  0x3b   :  { %2032 = vmatprep.mubr.msk.bf16.mxu0 %vm301_vm2, %v2109_v5  ;;  %2064 = vmatprep.mubr.msk.bf16.mxu1 %vm301_vm2, %v2110_v7  ;;  %v2116_v13 = vld [vmem:[#allocation2 + $0x98] sm:$0xff]   ;;  %v2117_v14 = vld [vmem:[#allocation2 + $0x20] sm:$0xff]   ;;  %v2119_v16 = vld [vmem:[#allocation2 + $0x28] sm:$0xff]   ;;  %p2465_p10 = scmp.ne.s32.totalorder %s1532_s22, %s2464_s23  ;;  %p2470_p12 = scmp.lt.s32.totalorder %s2464_s23, %s2464_s23 }
  0x3c   :  { %2030 = vmatprep.subr.bf16.mxu0 %v403_v6  ;;  %2097 = vmatprep.subr.bf16.mxu1 %v403_v6  ;;  %v2118_v15 = vld [vmem:[#allocation2 + $0xa0] sm:$0xff]   ;;  %v2120_v17 = vld [vmem:[#allocation2 + $0xa8] sm:$0xff]   ;;  %v2121_v18 = vld [vmem:[#allocation2 + $0x30] sm:$0xff]  }
  0x3d   :  { %v2122_v19 = vld [vmem:[#allocation2 + $0xb0] sm:$0xff]   ;;  %v2123_v20 = vld [vmem:[#allocation2 + $0x38] sm:$0xff]   ;;  %v2125_v22 = vld [vmem:[#allocation2 + $0x40] sm:$0xff]   ;;  %p2471_p13 = por %p2470_p12, %p2469_p11 }
  0x3e   :  { %2031 = vmatpush3.bf16.msra.mxu0 %v403_v6  ;;  %2099 = vmatpush3.bf16.msra.mxu1 %v403_v6  ;;  %v2124_v21 = vld [vmem:[#allocation2 + $0xb8] sm:$0xff]   ;;  %v2126_v23 = vld [vmem:[#allocation2 + $0xc0] sm:$0xff]   ;;  %v2127_v24 = vld [vmem:[#allocation2 + $0x48] sm:$0xff]  }
  0x3f   :  { %v2128_v25 = vld [vmem:[#allocation2 + $0xc8] sm:$0xff]   ;;  %v2129_v26 = vld [vmem:[#allocation2 + $0x50] sm:$0xff]   ;;  %v2131_v28 = vld [vmem:[#allocation2 + $0x58] sm:$0xff]   ;;  %p2472_p0 = pnand %p2471_p13, %p2465_p10 }
  0x40   :  { %v2130_v27 = vld [vmem:[#allocation2 + $0xd0] sm:$0xff]   ;;  %v2132_v29 = vld [vmem:[#allocation2 + $0xd8] sm:$0xff]   ;;  %v2133_v30 = vld [vmem:[#allocation2 + $0x60] sm:$0xff]  }
  0x41   :  { %2033 = vmatmul.mubr.msk.bf16.vlgmr.msra.gmra.mrb[0].mxu0 %vm301_vm2, %v2111_v8  ;;  %2065 = vmatmul.mubr.msk.bf16.vlgmr.msra.gmra.mrb[0].mxu1 %vm301_vm2, %v2112_v9  ;;  %v2134_v31 = vld [vmem:[#allocation2 + $0xe0] sm:$0xff]   ;;  %v2135_v32 = vld [vmem:[#allocation2 + $0x68] sm:$0xff]   ;;  %v2137_v34 = vld [vmem:[#allocation2 + $0x70] sm:$0xff]  }
  0x42   :  { %2036 = vmatprep.mubr.msk.bf16.mxu0 %vm301_vm2, %v2113_v10  ;;  %2068 = vmatprep.mubr.msk.bf16.mxu1 %vm301_vm2, %v2114_v11  ;;  %v2136_v33 = vld [vmem:[#allocation2 + $0xe8] sm:$0xff]   ;;  %v2138_v35 = vld [vmem:[#allocation2 + $0xf0] sm:$0xff]   ;;  %v2139_v36 = vld [vmem:[#allocation2 + $0x78] sm:$0xff]  }
  0x43   :  { %v2140_v37 = vld [vmem:[#allocation2 + $0xf8] sm:$0xff]   ;;  %v2600_v38 = vld [vmem:[#allocation7] ss:$0 sm:$0xff] }
  0x49   :  { %2037 = vmatmul.mubr.msk.bf16.gmra.mrb[4].mxu0 %vm301_vm2, %v2115_v12  ;;  %2069 = vmatmul.mubr.msk.bf16.gmra.mrb[4].mxu1 %vm301_vm2, %v2116_v13 }
  0x4a   :  { %2040 = vmatprep.mubr.msk.bf16.mxu0 %vm301_vm2, %v2117_v14  ;;  %2072 = vmatprep.mubr.msk.bf16.mxu1 %vm301_vm2, %v2118_v15 }
  0x51   :  { %2041 = vmatmul.mubr.msk.bf16.gmra.mrb[8].mxu0 %vm301_vm2, %v2119_v16  ;;  %2073 = vmatmul.mubr.msk.bf16.gmra.mrb[8].mxu1 %vm301_vm2, %v2120_v17 }
  0x52   :  { %2044 = vmatprep.mubr.msk.bf16.mxu0 %vm301_vm2, %v2121_v18  ;;  %2076 = vmatprep.mubr.msk.bf16.mxu1 %vm301_vm2, %v2122_v19 }
  0x59   :  { %2045 = vmatmul.mubr.msk.bf16.gmra.mrb[12].mxu0 %vm301_vm2, %v2123_v20  ;;  %2077 = vmatmul.mubr.msk.bf16.gmra.mrb[12].mxu1 %vm301_vm2, %v2124_v21 }
  0x5a   :  { %2048 = vmatprep.mubr.msk.bf16.mxu0 %vm301_vm2, %v2125_v22  ;;  %2080 = vmatprep.mubr.msk.bf16.mxu1 %vm301_vm2, %v2126_v23 }
  0x61   :  { %2049 = vmatmul.mubr.msk.bf16.gmra.mrb[16].mxu0 %vm301_vm2, %v2127_v24  ;;  %2081 = vmatmul.mubr.msk.bf16.gmra.mrb[16].mxu1 %vm301_vm2, %v2128_v25 }
  0x62   :  { %2052 = vmatprep.mubr.msk.bf16.mxu0 %vm301_vm2, %v2129_v26  ;;  %2084 = vmatprep.mubr.msk.bf16.mxu1 %vm301_vm2, %v2130_v27 }
  0x69   :  { %2053 = vmatmul.mubr.msk.bf16.gmra.mrb[20].mxu0 %vm301_vm2, %v2131_v28  ;;  %2085 = vmatmul.mubr.msk.bf16.gmra.mrb[20].mxu1 %vm301_vm2, %v2132_v29 }
  0x6a   :  { %2056 = vmatprep.mubr.msk.bf16.mxu0 %vm301_vm2, %v2133_v30  ;;  %2088 = vmatprep.mubr.msk.bf16.mxu1 %vm301_vm2, %v2134_v31 }
  0x71   :  { %2057 = vmatmul.mubr.msk.bf16.gmra.mrb[24].mxu0 %vm301_vm2, %v2135_v32  ;;  %2089 = vmatmul.mubr.msk.bf16.gmra.mrb[24].mxu1 %vm301_vm2, %v2136_v33 }
  0x72   :  { %2060 = vmatprep.mubr.msk.bf16.mxu0 %vm301_vm2, %v2137_v34  ;;  %2092 = vmatprep.mubr.msk.bf16.mxu1 %vm301_vm2, %v2138_v35 }
  0x79   :  { %2061 = vmatmul.mubr.msk.bf16.gmra.mrb[28].mxu0 %vm301_vm2, %v2139_v36  ;;  %2093 = vmatmul.mubr.msk.bf16.gmra.mrb[28].mxu1 %vm301_vm2, %v2140_v37 }
 0x114   :  { %v2034_v39 = vpop.f32.mrb[0].mxu0  ;;  %v2066_v40 = vpop.f32.mrb[0].mxu1 }
 0x115   :  { %v2603_v41 = vadd.f32 %v2034_v39, %v2600_v38  ;;  %v2606_v42 = vadd.f32 %v2066_v40, %v2600_v38  ;;  %v439_v43 = vpop.f32.mrb[1].mxu0  ;;  %v567_v44 = vpop.f32.mrb[1].mxu1 }
 0x116   :  { %v2609_v45 = vadd.f32 %v2600_v38, %v439_v43  ;;  %v2612_v46 = vadd.f32 %v2600_v38, %v567_v44  ;;  %v2035_v47 = vpop.f32.mrb[2].mxu0  ;;  %v2067_v48 = vpop.f32.mrb[2].mxu1 }
 0x117   :  { %v1613_v49 = vclamps-f32 %v2603_v41, 30.0  ;;  %v1645_v50 = vclamps-f32 %v2606_v42, 30.0  ;;  %v2617_v51 = vadd.f32 %v2035_v47, %v2600_v38  ;;  %v2620_v52 = vadd.f32 %v2067_v48, %v2600_v38  ;;  %v442_v53 = vpop.f32.mrb[3].mxu0  ;;  %v570_v54 = vpop.f32.mrb[3].mxu1 }
 0x118   :  { %v1611_v55 = vclamps-f32 %v2609_v45, 30.0  ;;  %v1643_v56 = vclamps-f32 %v2612_v46, 30.0  ;;  %v2625_v57 = vadd.f32 %v2600_v38, %v442_v53  ;;  %v2628_v58 = vadd.f32 %v2600_v38, %v570_v54 }
 0x119   :  { %v824_v59 = vsub.f32 0.0, %v1613_v49  ;;  %v856_v60 = vsub.f32 0.0, %v1645_v50  ;;  %v1614_v61 = vclamps-f32 %v2617_v51, 30.0  ;;  %v1646_v62 = vclamps-f32 %v2620_v52, 30.0 }
 0x11a   :  { %v822_v63 = vsub.f32 0.0, %v1611_v55  ;;  %v854_v0 = vsub.f32 0.0, %v1643_v56  ;;  %v1612_v1 = vclamps-f32 %v2625_v57, 30.0  ;;  %v1644_v2 = vclamps-f32 %v2628_v58, 30.0 }
 0x11b   :  { %v890_v3 = vmul.f32 1.442695, %v824_v59  ;;  %v954_v4 = vmul.f32 1.442695, %v856_v60  ;;  %v825_v5 = vsub.f32 0.0, %v1614_v61  ;;  %v857_v6 = vsub.f32 0.0, %v1646_v62 }
 0x11c   :  { %v886_v7 = vmul.f32 1.442695, %v822_v63  ;;  %v950_v8 = vmul.f32 1.442695, %v854_v0  ;;  %v823_v9 = vsub.f32 0.0, %v1612_v1  ;;  %v855_v10 = vsub.f32 0.0, %v1644_v2 }
 0x11d   :  { %2141 = vpow2.f32 %v890_v3  ;;  %v892_v11 = vmul.f32 1.442695, %v825_v5  ;;  %v956_v12 = vmul.f32 1.442695, %v857_v6  ;;  %v2038_v13 = vpop.f32.mrb[4].mxu0  ;;  %v2070_v14 = vpop.f32.mrb[4].mxu1 }
 0x11e   :  { %2143 = vpow2.f32 %v954_v4  ;;  %v888_v15 = vmul.f32 1.442695, %v823_v9  ;;  %v952_v16 = vmul.f32 1.442695, %v855_v10  ;;  %v2635_v17 = vadd.f32 %v2038_v13, %v2600_v38  ;;  %v455_v18 = vpop.f32.mrb[5].mxu0  ;;  %v583_v19 = vpop.f32.mrb[5].mxu1 }
 0x11f   :  { %2145 = vpow2.f32 %v886_v7  ;;  %v2638_v20 = vadd.f32 %v2070_v14, %v2600_v38  ;;  %v2641_v21 = vadd.f32 %v2600_v38, %v455_v18  ;;  %v2644_v22 = vadd.f32 %v2600_v38, %v583_v19  ;;  %v2039_v23 = vpop.f32.mrb[6].mxu0  ;;  %v2071_v24 = vpop.f32.mrb[6].mxu1 }
 0x120   :  { %2147 = vpow2.f32 %v950_v8  ;;  %v1617_v25 = vclamps-f32 %v2635_v17, 30.0  ;;  %v2648_v26 = vadd.f32 %v2039_v23, %v2600_v38  ;;  %v2651_v27 = vadd.f32 %v2071_v24, %v2600_v38  ;;  %v458_v28 = vpop.f32.mrb[7].mxu0  ;;  %v586_v29 = vpop.f32.mrb[7].mxu1 }
 0x121   :  { %2149 = vpow2.f32 %v892_v11  ;;  %v1649_v30 = vclamps-f32 %v2638_v20, 30.0  ;;  %v1615_v31 = vclamps-f32 %v2641_v21, 30.0  ;;  %v1647_v32 = vclamps-f32 %v2644_v22, 30.0 }
 0x122   :  { %2151 = vpow2.f32 %v956_v12  ;;  %v828_v33 = vsub.f32 0.0, %v1617_v25  ;;  %v1618_v34 = vclamps-f32 %v2648_v26, 30.0  ;;  %v1650_v35 = vclamps-f32 %v2651_v27, 30.0 }
 0x123   :  { %2153 = vpow2.f32 %v888_v15  ;;  %v860_v36 = vsub.f32 0.0, %v1649_v30  ;;  %v826_v37 = vsub.f32 0.0, %v1615_v31  ;;  %v858_v39 = vsub.f32 0.0, %v1647_v32 }
 0x124   :  { %2155 = vpow2.f32 %v952_v16  ;;  %v898_v40 = vmul.f32 1.442695, %v828_v33  ;;  %v829_v43 = vsub.f32 0.0, %v1618_v34  ;;  %v861_v44 = vsub.f32 0.0, %v1650_v35  ;;  %v2042_v47 = vpop.f32.mrb[8].mxu0  ;;  %v2074_v48 = vpop.f32.mrb[8].mxu1 }
 0x125   :  { %v962_v49 = vmul.f32 1.442695, %v860_v36  ;;  %v894_v50 = vmul.f32 1.442695, %v826_v37  ;;  %v958_v53 = vmul.f32 1.442695, %v858_v39  ;;  %v2659_v54 = vadd.f32 %v2600_v38, %v458_v28 }
 0x126   :  { %2157 = vpow2.f32 %v898_v40  ;;  %v2661_v55 = vmul.f32 1.442695, %v829_v43  ;;  %v2663_v56 = vmul.f32 1.442695, %v861_v44  ;;  %v2666_v59 = vadd.f32 %v2600_v38, %v586_v29  ;;  %v471_v60 = vpop.f32.mrb[9].mxu0  ;;  %v599_v61 = vpop.f32.mrb[9].mxu1 }
 0x127   :  { %v2142_v62 = vpop.eup %2141  ;;  %2159 = vpow2.f32 %v962_v49  ;;  %v1616_v63 = vclamps-f32 %v2659_v54, 30.0  ;;  %v2670_v0 = vadd.f32 %v2042_v47, %v2600_v38  ;;  %v2673_v1 = vadd.f32 %v2074_v48, %v2600_v38  ;;  %v2043_v2 = vpop.f32.mrb[10].mxu0 }
 0x128   :  { %v2075_v3 = vpop.f32.mrb[10].mxu1  ;;  %v2144_v4 = vpop.eup %2143  ;;  %v1016_v5 = vadd.f32 1.0, %v2142_v62  ;;  %2161 = vpow2.f32 %v894_v50  ;;  %v1648_v6 = vclamps-f32 %v2666_v59, 30.0  ;;  %v2677_v7 = vadd.f32 %v2600_v38, %v471_v60 }
 0x129   :  { %v474_v8 = vpop.f32.mrb[11].mxu0  ;;  %v2679_v9 = vpop.f32.mrb[11].mxu1  ;;  %v1048_v11 = vadd.f32 1.0, %v2144_v4  ;;  %2163 = vpow2.f32 %v958_v53  ;;  %v827_v12 = vsub.f32 0.0, %v1616_v63  ;;  %v1621_v13 = vclamps-f32 %v2670_v0, 30.0 }
 0x12a   :  { %v2146_v10 = vpop.eup %2145  ;;  %2165 = vrcp.f32 %v1016_v5  ;;  %v859_v16 = vsub.f32 0.0, %v1648_v6  ;;  %v1653_v18 = vclamps-f32 %v2673_v1, 30.0  ;;  %v1619_v37 = vclamps-f32 %v2677_v7, 30.0 }
 0x12b   :  { %v2148_v14 = vpop.eup %2147  ;;  %v1014_v15 = vadd.f32 1.0, %v2146_v10  ;;  %2167 = vrcp.f32 %v1048_v11  ;;  %v2683_v24 = vmul.f32 1.442695, %v827_v12  ;;  %v832_v25 = vsub.f32 0.0, %v1621_v13 }
 0x12c   :  { %v2150_v19 = vpop.eup %2149  ;;  %v1046_v23 = vadd.f32 1.0, %v2148_v14  ;;  %v2685_v30 = vmul.f32 1.442695, %v859_v16  ;;  %v864_v31 = vsub.f32 0.0, %v1653_v18  ;;  %v2687_v32 = vpop.f32.mrb[12].mxu0  ;;  %v2701_v48 = vadd.f32 %v2600_v38, %v599_v61 }
 0x12d   :  { %v2152_v28 = vpop.eup %2151  ;;  %2169 = vrcp.f32 %v1014_v15  ;;  %v1017_v29 = vadd.f32 1.0, %v2150_v19  ;;  %v2689_v33 = vpop.f32.mrb[12].mxu1  ;;  %v2691_v36 = vmul.f32 1.442695, %v832_v25  ;;  %v830_v60 = vsub.f32 0.0, %v1619_v37 }
 0x12e   :  { %v2154_v34 = vpop.eup %2153  ;;  %2171 = vrcp.f32 %v1046_v23  ;;  %v1049_v35 = vadd.f32 1.0, %v2152_v28  ;;  %v2694_v39 = vpop.f32.mrb[13].mxu0  ;;  %v2698_v47 = vmul.f32 1.442695, %v864_v31  ;;  %v2708_v62 = vadd.f32 %v2043_v2, %v2600_v38 }
 0x12f   :  { %v2696_v40 = vpop.f32.mrb[13].mxu1  ;;  %v2156_v43 = vpop.eup %2155  ;;  %2173 = vrcp.f32 %v1017_v29  ;;  %v1015_v44 = vadd.f32 1.0, %v2154_v34  ;;  %v1651_v6 = vclamps-f32 %v2701_v48, 30.0  ;;  %v2716_v61 = vadd.f32 %v2075_v3, %v2600_v38 }
 0x130   :  { %v2703_v49 = vpop.f32.mrb[14].mxu0  ;;  %v2705_v50 = vpop.f32.mrb[14].mxu1  ;;  %2175 = vrcp.f32 %v1049_v35  ;;  %v1047_v53 = vadd.f32 1.0, %v2156_v43  ;;  %v2719_v10 = vadd.f32 %v2600_v38, %v474_v8  ;;  %v2721_v13 = vmul.f32 1.442695, %v830_v60 }
 0x131   :  { %v2710_v63 = vpop.f32.mrb[15].mxu0  ;;  %v2712_v4 = vpop.f32.mrb[15].mxu1  ;;  %2177 = vrcp.f32 %v1015_v44  ;;  %v1622_v2 = vclamps-f32 %v2708_v62, 30.0  ;;  %v862_v16 = vsub.f32 0.0, %v1651_v6  ;;  %v1654_v18 = vclamps-f32 %v2716_v61, 30.0 }
 0x132   :  { %v2158_v5 = vpop.eup %2157  ;;  %2179 = vrcp.f32 %v1047_v53  ;;  %v1620_v8 = vclamps-f32 %v2719_v10, 30.0 }
 0x133   :  { %v2160_v11 = vpop.eup %2159  ;;  %v1020_v12 = vadd.f32 1.0, %v2158_v5  ;;  %2181 = vpow2.f32 %v2661_v55  ;;  %v833_v23 = vsub.f32 0.0, %v1622_v2  ;;  %v966_v29 = vmul.f32 1.442695, %v862_v16 }
 0x134   :  { %v2162_v14 = vpop.eup %2161  ;;  %v1052_v15 = vadd.f32 1.0, %v2160_v11  ;;  %v865_v31 = vsub.f32 0.0, %v1654_v18  ;;  %v2727_v34 = vpop.f32.mrb[16].mxu0  ;;  %v831_v44 = vsub.f32 0.0, %v1620_v8 }
 0x135   :  { %v2164_v19 = vpop.eup %2163  ;;  %2183 = vrcp.f32 %v1020_v12  ;;  %v1018_v3 = vadd.f32 1.0, %v2162_v14  ;;  %v2729_v35 = vpop.f32.mrb[16].mxu1  ;;  %v908_v43 = vmul.f32 1.442695, %v833_v23  ;;  %v2741_v12 = vadd.f32 %v2600_v38, %v2679_v9 }
 0x136   :  { %v2166_v25 = vpop.eup %2165  ;;  %2185 = vrcp.f32 %v1052_v15  ;;  %v1050_v28 = vadd.f32 1.0, %v2164_v19  ;;  %v2732_v53 = vpop.f32.mrb[17].mxu0  ;;  %v2737_v11 = vmul.f32 1.442695, %v865_v31  ;;  %v2749_v16 = vmul.f32 1.442695, %v831_v44 }
 0x137   :  { %v2168_v37 = vpop.eup %2167  ;;  %v1144_v55 = vmul.f32 %v2166_v25, %v2603_v41  ;;  %2187 = vrcp.f32 %v1018_v3  ;;  %v2734_v60 = vpop.f32.mrb[17].mxu1  ;;  %v1652_v23 = vclamps-f32 %v2741_v12, 30.0  ;;  %v2771_v25 = vadd.f32 %v2600_v38, %v2694_v39 }
 0x138   :  { %v2170_v5 = vpop.eup %2169  ;;  %v1176_v6 = vmul.f32 %v2168_v37, %v2606_v42  ;;  %2189 = vrcp.f32 %v1050_v28  ;;  %v2743_v2 = vpop.f32.mrb[18].mxu0  ;;  %v2753_v42 = vadd.f32 %v2687_v32, %v2600_v38 }
 0x139   :  { %v2745_v41 = vpop.f32.mrb[18].mxu1  ;;  %v2172_v14 = vpop.eup %2171  ;;  %v1142_v15 = vmul.f32 %v2170_v5, %v2609_v45  ;;  %2191 = vpow2.f32 %v2663_v56  ;;  %v2764_v45 = vadd.f32 %v2689_v33, %v2600_v38  ;;  %v863_v28 = vsub.f32 0.0, %v1652_v23 }
 0x13a   :  { %v2755_v18 = vpop.f32.mrb[19].mxu0  ;;  %v2757_v19 = vpop.f32.mrb[19].mxu1  ;;  %v1174_v3 = vmul.f32 %v2172_v14, %v2612_v46  ;;  %2193 = vpow2.f32 %v2683_v24  ;;  %v1625_v32 = vclamps-f32 %v2753_v42, 30.0 }
 0x13b   :  { %v2174_v9 = vpop.eup %2173  ;;  %2195 = vpow2.f32 %v2685_v30  ;;  %v1657_v33 = vclamps-f32 %v2764_v45, 30.0  ;;  %v968_v14 = vmul.f32 1.442695, %v863_v28 }
 0x13c   :  { %v2176_v56 = vpop.eup %2175  ;;  %v1145_v8 = vmul.f32 %v2174_v9, %v2617_v51  ;;  %2197 = vpow2.f32 %v2691_v36  ;;  %v836_v30 = vsub.f32 0.0, %v1625_v32  ;;  %v2782_v36 = vpop.f32.mrb[20].mxu1 }
 0x13d   :  { %v2178_v46 = vpop.eup %2177  ;;  %v1177_v24 = vmul.f32 %v2176_v56, %v2620_v52  ;;  %2199 = vpow2.f32 %v2698_v47  ;;  %v2780_v52 = vpop.f32.mrb[20].mxu0 }
 0x13e   :  { %v2180_v31 = vpop.eup %2179  ;;  %v1811_v37 = vpack.c.bf16 %v1145_v8, %v1144_v55  ;;  %v1143_v51 = vmul.f32 %v2178_v46, %v2625_v57  ;;  %2201 = vpow2.f32 %v2721_v13  ;;  %v914_v57 = vmul.f32 1.442695, %v836_v30  ;;  %v2784_v56 = vpop.f32.mrb[21].mxu0 }
 0x13f   :  { %v2182_v44 = vpop.eup %2181  ;;  %v1891_v5 = vpack.c.bf16 %v1177_v24, %v1176_v6  ;;  %v1175_v39 = vmul.f32 %v2180_v31, %v2628_v58  ;;  %2203 = vpow2.f32 %v966_v29  ;;  %v2786_v47 = vpop.f32.mrb[21].mxu1  ;;  %v868_v8 = vsub.f32 0.0, %v1657_v33 }
 0x140   :  { %v2184_v9 = vpop.eup %2183  ;;  %1963 = vst [vmem:[#allocation8 + $0x8] sm:$0xff] %v1811_v37   ;;  %v1806_v23 = vpack.c.bf16 %v1143_v51, %v1142_v15  ;;  %v1021_v55 = vadd.f32 1.0, %v2182_v44  ;;  %2205 = vpow2.f32 %v908_v43  ;;  %v2791_v32 = vpop.f32.mrb[22].mxu0  ;;  %v1623_v24 = vclamps-f32 %v2771_v25, 30.0 }
 0x141   :  { %v2186_v6 = vpop.eup %2185  ;;  %1979 = vst [vmem:[#allocation8 + $0x88] sm:$0xff] %v1891_v5   ;;  %v1886_v58 = vpack.c.bf16 %v1175_v39, %v1174_v3  ;;  %v2789_v13 = vmul.f32 %v2184_v9, %v2635_v17  ;;  %v2793_v46 = vpop.f32.mrb[22].mxu1  ;;  %v2801_v3 = vadd.f32 %v2600_v38, %v2696_v40  ;;  %v2815_v31 = vadd.f32 %v2703_v49, %v2600_v38 }
 0x142   :  { %v2188_v15 = vpop.eup %2187  ;;  %1807 = vst [vmem:[#allocation8] sm:$0xff] %v1806_v23   ;;  %v2796_v29 = vmul.f32 %v2186_v6, %v2638_v20  ;;  %2207 = vrcp.f32 %v1021_v55  ;;  %v2803_v17 = vpop.f32.mrb[23].mxu0  ;;  %v2811_v20 = vmul.f32 1.442695, %v868_v8  ;;  %v834_v51 = vsub.f32 0.0, %v1623_v24 }
 0x143   :  { %v2805_v43 = vpop.f32.mrb[23].mxu1  ;;  %v2190_v28 = vpop.eup %2189  ;;  %1978 = vst [vmem:[#allocation8 + $0x80] sm:$0xff] %v1886_v58   ;;  %v2808_v33 = vmul.f32 %v2188_v15, %v2641_v21  ;;  %2209 = vpow2.f32 %v2737_v11  ;;  %v1655_v30 = vclamps-f32 %v2801_v3, 30.0  ;;  %v1626_v11 = vclamps-f32 %v2815_v31, 30.0 }
 0x144   :  { %v2192_v37 = vpop.eup %2191  ;;  %v2818_v40 = vmul.f32 %v2190_v28, %v2644_v22  ;;  %2211 = vpow2.f32 %v2749_v16  ;;  %v2825_v5 = vadd.f32 %v2705_v50, %v2600_v38  ;;  %v2827_v9 = vmul.f32 1.442695, %v834_v51  ;;  %v2830_v58 = vpop.f32.mrb[24].mxu0 }
 0x145   :  { %v2194_v44 = vpop.eup %2193  ;;  %v1053_v21 = vadd.f32 1.0, %v2192_v37  ;;  %2213 = vpow2.f32 %v968_v14  ;;  %v866_v22 = vsub.f32 0.0, %v1655_v30  ;;  %v837_v55 = vsub.f32 0.0, %v1626_v11  ;;  %3129 = vst [vmem:[#allocation12_spill] sm:$0xff] %v2830_v58  ;;  %v2832_v14 = vpop.f32.mrb[24].mxu1 }
 0x146   :  { %v2196_v49 = vpop.eup %2195  ;;  %v1019_v39 = vadd.f32 1.0, %v2194_v44  ;;  %2215 = vpow2.f32 %v914_v57  ;;  %v1658_v6 = vclamps-f32 %v2825_v5, 30.0  ;;  %3130 = vst [vmem:[#allocation13_spill] sm:$0xff] %v2832_v14  ;;  %v2838_v57 = vadd.f32 %v2600_v38, %v2710_v63  ;;  %v2840_v24 = vpop.f32.mrb[25].mxu0 }
 0x147   :  { %v2198_v23 = vpop.eup %2197  ;;  %2217 = vrcp.f32 %v1053_v21  ;;  %v1051_v16 = vadd.f32 1.0, %v2196_v49  ;;  %v2834_v15 = vmul.f32 1.442695, %v866_v22  ;;  %3131 = vst [vmem:[#allocation14_spill] sm:$0xff] %v2840_v24  ;;  %v2842_v28 = vpop.f32.mrb[25].mxu1  ;;  %v2853_v22 = vadd.f32 %v2600_v38, %v2712_v4 }
 0x148   :  { %v2200_v8 = vpop.eup %2199  ;;  %2219 = vrcp.f32 %v1019_v39  ;;  %v1024_v50 = vadd.f32 1.0, %v2198_v23  ;;  %3132 = vst [vmem:[#allocation15_spill] sm:$0xff] %v2842_v28  ;;  %v2844_v30 = vmul.f32 1.442695, %v837_v55  ;;  %v869_v44 = vsub.f32 0.0, %v1658_v6  ;;  %v2846_v21 = vpop.f32.mrb[26].mxu0 }
 0x149   :  { %v2202_v37 = vpop.eup %2201  ;;  %2221 = vrcp.f32 %v1051_v16  ;;  %v1056_v51 = vadd.f32 1.0, %v2200_v8  ;;  %3133 = vst [vmem:[#allocation16_spill] sm:$0xff] %v2846_v21  ;;  %v2848_v11 = vpop.f32.mrb[26].mxu1  ;;  %v1624_v63 = vclamps-f32 %v2838_v57, 30.0  ;;  %v1656_v4 = vclamps-f32 %v2853_v22, 30.0 }
 0x14a   :  { %3134 = vst [vmem:[#allocation17_spill] sm:$0xff] %v2848_v11  ;;  %v2204_v49 = vpop.eup %2203  ;;  %2223 = vrcp.f32 %v1024_v50  ;;  %v1022_v39 = vadd.f32 1.0, %v2202_v37  ;;  %v2855_v23 = vpop.f32.mrb[27].mxu0  ;;  %v2859_v8 = vmul.f32 1.442695, %v869_v44  ;;  %v2863_v11 = vadd.f32 %v2727_v34, %v2600_v38 }
 0x14b   :  { %3135 = vst [vmem:[#allocation18_spill] sm:$0xff] %v2855_v23  ;;  %v2857_v16 = vpop.f32.mrb[27].mxu1  ;;  %v2206_v55 = vpop.eup %2205  ;;  %2225 = vrcp.f32 %v1056_v51  ;;  %v1054_v6 = vadd.f32 1.0, %v2204_v49  ;;  %v835_v21 = vsub.f32 0.0, %v1624_v63  ;;  %v2870_v51 = vadd.f32 %v2729_v35, %v2600_v38 }
 0x14c   :  { %3136 = vst [vmem:[#allocation19_spill] sm:$0xff] %v2857_v16  ;;  %v2208_v50 = vpop.eup %2207  ;;  %2227 = vrcp.f32 %v1022_v39  ;;  %v1025_v37 = vadd.f32 1.0, %v2206_v55  ;;  %v1629_v16 = vclamps-f32 %v2863_v11, 30.0  ;;  %v867_v24 = vsub.f32 0.0, %v1656_v4 }
 0x14d   :  { %v2210_v28 = vpop.eup %2209  ;;  %v1149_v23 = vmul.f32 %v2208_v50, %v2648_v26  ;;  %2229 = vrcp.f32 %v1054_v6  ;;  %v912_v49 = vmul.f32 1.442695, %v835_v21  ;;  %v2874_v26 = vpop.f32.mrb[28].mxu0 }
 0x14e   :  { %v2212_v44 = vpop.eup %2211  ;;  %2231 = vrcp.f32 %v1025_v37  ;;  %v1057_v34 = vadd.f32 1.0, %v2210_v28  ;;  %v840_v14 = vsub.f32 0.0, %v1629_v16  ;;  %v2876_v6 = vpop.f32.mrb[28].mxu1  ;;  %v976_v58 = vmul.f32 1.442695, %v867_v24 }
 0x14f   :  { %v2214_v39 = vpop.eup %2213  ;;  %v1821_v63 = vpack.c.bf16 %v1149_v23, %v2789_v13  ;;  %v1023_v55 = vadd.f32 1.0, %v2212_v44  ;;  %2233 = vpow2.f32 %v2811_v20  ;;  %v1661_v37 = vclamps-f32 %v2870_v51, 30.0  ;;  %v2879_v28 = vpop.f32.mrb[29].mxu0 }
 0x150   :  { %v2216_v50 = vpop.eup %2215  ;;  %2235 = vrcp.f32 %v1057_v34  ;;  %v1055_v35 = vadd.f32 1.0, %v2214_v39  ;;  %v2881_v21 = vpop.f32.mrb[29].mxu1  ;;  %v922_v20 = vmul.f32 1.442695, %v840_v14  ;;  %v2885_v23 = vadd.f32 %v2600_v38, %v2732_v53 }
 0x151   :  { %3137 = vst [vmem:[#allocation20_spill] sm:$0xff] %v2881_v21  ;;  %v2218_v4 = vpop.eup %2217  ;;  %1965 = vst [vmem:[#allocation8 + $0x18] sm:$0xff] %v1821_v63   ;;  %2237 = vrcp.f32 %v1023_v55  ;;  %v1028_v13 = vadd.f32 1.0, %v2216_v50  ;;  %v2887_v16 = vpop.f32.mrb[30].mxu0  ;;  %v872_v39 = vsub.f32 0.0, %v1661_v37  ;;  %v2894_v21 = vadd.f32 %v2600_v38, %v2734_v60 }
 0x152   :  { %v2889_v44 = vpop.f32.mrb[30].mxu1  ;;  %v2220_v24 = vpop.eup %2219  ;;  %v1181_v34 = vmul.f32 %v2218_v4, %v2651_v27  ;;  %2239 = vrcp.f32 %v1055_v35  ;;  %v1627_v50 = vclamps-f32 %v2885_v23, 30.0 }
 0x153   :  { %3138 = vst [vmem:[#allocation21_spill] sm:$0xff] %v2889_v44  ;;  %v2896_v63 = vpop.f32.mrb[31].mxu0  ;;  %v2898_v14 = vpop.f32.mrb[31].mxu1  ;;  %v1147_v53 = vmul.f32 %v2220_v24, %v2659_v54  ;;  %2241 = vrcp.f32 %v1028_v13  ;;  %v2904_v44 = vadd.f32 %v2743_v2, %v2600_v38  ;;  %v986_v37 = vmul.f32 1.442695, %v872_v39 }
 0x154   :  { %3139 = vst [vmem:[#allocation22_spill] sm:$0xff] %v2896_v63  ;;  %3140 = vst [vmem:[#allocation23_spill] sm:$0xff] %v2898_v14  ;;  %v2222_v55 = vpop.eup %2221  ;;  %v1901_v35 = vpack.c.bf16 %v1181_v34, %v2796_v29  ;;  %2243 = vpow2.f32 %v2827_v9  ;;  %v838_v13 = vsub.f32 0.0, %v1627_v50 }
 0x155   :  { %v2224_v27 = vpop.eup %2223  ;;  %v1179_v60 = vmul.f32 %v2222_v55, %v2666_v59  ;;  %v1816_v14 = vpack.c.bf16 %v1147_v53, %v2808_v33  ;;  %2245 = vpow2.f32 %v2834_v15  ;;  %v1659_v59 = vclamps-f32 %v2894_v21, 30.0 }
 0x156   :  { %v2226_v4 = vpop.eup %2225  ;;  %v1152_v54 = vmul.f32 %v2224_v27, %v2670_v0  ;;  %1981 = vst [vmem:[#allocation8 + $0x98] sm:$0xff] %v1901_v35   ;;  %2247 = vpow2.f32 %v2844_v30  ;;  %v918_v0 = vmul.f32 1.442695, %v838_v13  ;;  %v1630_v33 = vclamps-f32 %v2904_v44, 30.0 }
 0x157   :  { %v2228_v24 = vpop.eup %2227  ;;  %v1896_v2 = vpack.c.bf16 %v1179_v60, %v2818_v40  ;;  %v1184_v63 = vmul.f32 %v2226_v4, %v2673_v1  ;;  %1964 = vst [vmem:[#allocation8 + $0x10] sm:$0xff] %v1816_v14   ;;  %2249 = vpow2.f32 %v2859_v8  ;;  %v870_v40 = vsub.f32 0.0, %v1659_v59 }
 0x158   :  { %v2230_v29 = vpop.eup %2229  ;;  %v1150_v9 = vmul.f32 %v2228_v24, %v2677_v7  ;;  %2251 = vpow2.f32 %v912_v49  ;;  %v2922_v1 = vadd.f32 %v2745_v41, %v2600_v38  ;;  %v841_v7 = vsub.f32 0.0, %v1630_v33 }
 0x159   :  { %v2232_v15 = vpop.eup %2231  ;;  %1980 = vst [vmem:[#allocation8 + $0x90] sm:$0xff] %v1896_v2   ;;  %v1182_v34 = vmul.f32 %v2230_v29, %v2701_v48  ;;  %2253 = vpow2.f32 %v976_v58  ;;  %v2927_v8 = vadd.f32 %v2600_v38, %v2755_v18  ;;  %v982_v53 = vmul.f32 1.442695, %v870_v40 }
 0x15a   :  { %v2234_v30 = vpop.eup %2233  ;;  %v1153_v39 = vmul.f32 %v2232_v15, %v2708_v62  ;;  %2255 = vpow2.f32 %v922_v20  ;;  %v1662_v48 = vclamps-f32 %v2922_v1, 30.0  ;;  %v924_v27 = vmul.f32 1.442695, %v841_v7 }
 0x15b   :  { %v2236_v14 = vpop.eup %2235  ;;  %v1060_v55 = vadd.f32 1.0, %v2234_v30  ;;  %2257 = vpow2.f32 %v986_v37  ;;  %v1628_v18 = vclamps-f32 %v2927_v8, 30.0  ;;  %v2948_v15 = vadd.f32 %v2782_v36, %v2600_v38 }
 0x15c   :  { %v2238_v49 = vpop.eup %2237  ;;  %v1831_v50 = vpack.c.bf16 %v1153_v39, %v1152_v54  ;;  %v1185_v41 = vmul.f32 %v2236_v14, %v2716_v61  ;;  %v873_v58 = vsub.f32 0.0, %v1662_v48  ;;  %v2936_v54 = vadd.f32 %v2600_v38, %v2757_v19 }
 0x15d   :  { %v2240_v35 = vpop.eup %2239  ;;  %v1151_v62 = vmul.f32 %v2238_v49, %v2719_v10  ;;  %2259 = vrcp.f32 %v1060_v55  ;;  %v2954_v55 = vadd.f32 %v2600_v38, %v2784_v56 }
 0x15e   :  { %v2242_v60 = vpop.eup %2241  ;;  %1967 = vst [vmem:[#allocation8 + $0x28] sm:$0xff] %v1831_v50   ;;  %v1911_v4 = vpack.c.bf16 %v1185_v41, %v1184_v63  ;;  %v1183_v20 = vmul.f32 %v2240_v35, %v2741_v12  ;;  %2261 = vpow2.f32 %v918_v0  ;;  %v988_v10 = vmul.f32 1.442695, %v873_v58 }
 0x15f   :  { %v2244_v61 = vpop.eup %2243  ;;  %v1826_v37 = vpack.c.bf16 %v1151_v62, %v1150_v9  ;;  %v2939_v13 = vmul.f32 %v2242_v60, %v2753_v42  ;;  %2263 = vpow2.f32 %v982_v53  ;;  %v839_v63 = vsub.f32 0.0, %v1628_v18 }
 0x160   :  { %v2246_v24 = vpop.eup %2245  ;;  %1983 = vst [vmem:[#allocation8 + $0xa8] sm:$0xff] %v1911_v4   ;;  %v1906_v2 = vpack.c.bf16 %v1183_v20, %v1182_v34  ;;  %v1026_v59 = vadd.f32 1.0, %v2244_v61  ;;  %2265 = vpow2.f32 %v924_v27  ;;  %v1660_v19 = vclamps-f32 %v2936_v54, 30.0 }
 0x161   :  { %v2248_v29 = vpop.eup %2247  ;;  %1966 = vst [vmem:[#allocation8 + $0x20] sm:$0xff] %v1826_v37   ;;  %v1058_v12 = vadd.f32 1.0, %v2246_v24  ;;  %2267 = vpow2.f32 %v988_v10  ;;  %v2944_v9 = vadd.f32 %v2780_v52, %v2600_v38  ;;  %v920_v33 = vmul.f32 1.442695, %v839_v63 }
 0x162   :  { %v2250_v42 = vpop.eup %2249  ;;  %1982 = vst [vmem:[#allocation8 + $0xa0] sm:$0xff] %v1906_v2   ;;  %2269 = vrcp.f32 %v1026_v59  ;;  %v1029_v0 = vadd.f32 1.0, %v2248_v29  ;;  %v871_v30 = vsub.f32 0.0, %v1660_v19  ;;  %v1665_v52 = vclamps-f32 %v2948_v15, 30.0 }
 0x163   :  { %v2252_v34 = vpop.eup %2251  ;;  %2271 = vrcp.f32 %v1058_v12  ;;  %v1061_v40 = vadd.f32 1.0, %v2250_v42  ;;  %v1633_v39 = vclamps-f32 %v2944_v9, 30.0  ;;  %v1631_v35 = vclamps-f32 %v2954_v55, 30.0 }
 0x164   :  { %v2254_v7 = vpop.eup %2253  ;;  %2273 = vrcp.f32 %v1029_v0  ;;  %v1027_v14 = vadd.f32 1.0, %v2252_v34  ;;  %v984_v36 = vmul.f32 1.442695, %v871_v30  ;;  %v876_v27 = vsub.f32 0.0, %v1665_v52 }
 0x165   :  { %v2256_v53 = vpop.eup %2255  ;;  %2275 = vrcp.f32 %v1061_v40  ;;  %v1059_v48 = vadd.f32 1.0, %v2254_v7  ;;  %v844_v49 = vsub.f32 0.0, %v1633_v39  ;;  %v2959_v60 = vadd.f32 %v2600_v38, %v2786_v47 }
 0x166   :  { %v2258_v50 = vpop.eup %2257  ;;  %2277 = vrcp.f32 %v1027_v14  ;;  %v1032_v41 = vadd.f32 1.0, %v2256_v53  ;;  %v994_v20 = vmul.f32 1.442695, %v876_v27  ;;  %v842_v61 = vsub.f32 0.0, %v1631_v35 }
 0x167   :  { %v2260_v62 = vpop.eup %2259  ;;  %2279 = vrcp.f32 %v1059_v48  ;;  %v1064_v58 = vadd.f32 1.0, %v2258_v50  ;;  %v930_v18 = vmul.f32 1.442695, %v844_v49  ;;  %v1663_v24 = vclamps-f32 %v2959_v60, 30.0 }
 0x168   :  { %v2262_v56 = vpop.eup %2261  ;;  %v1188_v4 = vmul.f32 %v2260_v62, %v2764_v45  ;;  %2281 = vrcp.f32 %v1032_v41  ;;  %v2965_v2 = vadd.f32 %v2791_v32, %v2600_v38  ;;  %v926_v47 = vmul.f32 1.442695, %v842_v61 }
 0x169   :  { %v2264_v37 = vpop.eup %2263  ;;  %2283 = vrcp.f32 %v1064_v58  ;;  %v1030_v10 = vadd.f32 1.0, %v2262_v56  ;;  %v2969_v29 = vadd.f32 %v2793_v46, %v2600_v38  ;;  %v874_v19 = vsub.f32 0.0, %v1663_v24 }
 0x16a   :  { %v2266_v59 = vpop.eup %2265  ;;  %v1062_v63 = vadd.f32 1.0, %v2264_v37  ;;  %2285 = vpow2.f32 %v920_v33  ;;  %v1634_v42 = vclamps-f32 %v2965_v2, 30.0  ;;  %v2975_v40 = vadd.f32 %v2600_v38, %v2803_v17 }
 0x16b   :  { %v2268_v45 = vpop.eup %2267  ;;  %2287 = vrcp.f32 %v1030_v10  ;;  %v1033_v12 = vadd.f32 1.0, %v2266_v59  ;;  %v1666_v32 = vclamps-f32 %v2969_v29, 30.0  ;;  %v990_v46 = vmul.f32 1.442695, %v874_v19  ;;  %v3143_v19 = vld [vmem:[#allocation14_spill] sm:$0xff] }
 0x16c   :  { %v2270_v0 = vpop.eup %2269  ;;  %2289 = vrcp.f32 %v1062_v63  ;;  %v1065_v34 = vadd.f32 1.0, %v2268_v45  ;;  %v845_v39 = vsub.f32 0.0, %v1634_v42  ;;  %v1632_v53 = vclamps-f32 %v2975_v40, 30.0  ;;  %v3142_v63 = vld [vmem:[#allocation13_spill] sm:$0xff] }
 0x16d   :  { %v2272_v33 = vpop.eup %2271  ;;  %v1154_v30 = vmul.f32 %v2270_v0, %v2771_v25  ;;  %2291 = vrcp.f32 %v1033_v12  ;;  %v877_v52 = vsub.f32 0.0, %v1666_v32  ;;  %v2983_v17 = vadd.f32 %v2600_v38, %v2805_v43 }
 0x16e   :  { %v2274_v7 = vpop.eup %2273  ;;  %v1186_v14 = vmul.f32 %v2272_v33, %v2801_v3  ;;  %2293 = vrcp.f32 %v1065_v34  ;;  %v932_v50 = vmul.f32 1.442695, %v845_v39  ;;  %v843_v35 = vsub.f32 0.0, %v1632_v53  ;;  %v3144_v33 = vld [vmem:[#allocation15_spill] sm:$0xff] }
 0x16f   :  { %v2276_v48 = vpop.eup %2275  ;;  %v1157_v49 = vmul.f32 %v2274_v7, %v2815_v31  ;;  %2295 = vpow2.f32 %v984_v36  ;;  %v996_v27 = vmul.f32 1.442695, %v877_v52  ;;  %v1664_v31 = vclamps-f32 %v2983_v17, 30.0 }
 0x170   :  { %v2278_v25 = vpop.eup %2277  ;;  %v1189_v41 = vmul.f32 %v2276_v48, %v2825_v5  ;;  %2297 = vpow2.f32 %v930_v18  ;;  %v928_v38 = vmul.f32 1.442695, %v843_v35  ;;  %v3145_v48 = vld [vmem:[#allocation16_spill] sm:$0xff] }
 0x171   :  { %v2280_v3 = vpop.eup %2279  ;;  %v1841_v62 = vpack.c.bf16 %v1157_v49, %v2939_v13  ;;  %v1155_v58 = vmul.f32 %v2278_v25, %v2838_v57  ;;  %2299 = vpow2.f32 %v994_v20  ;;  %v875_v18 = vsub.f32 0.0, %v1664_v31  ;;  %v2991_v57 = vld [vmem:[#allocation7] ss:$0 sm:$0xff]  ;;  %v3141_v20 = vld [vmem:[#allocation12_spill] sm:$0xff] }
 0x172   :  { %v2282_v36 = vpop.eup %2281  ;;  %v1921_v56 = vpack.c.bf16 %v1189_v41, %v1188_v4  ;;  %v1187_v61 = vmul.f32 %v2280_v3, %v2853_v22  ;;  %2301 = vpow2.f32 %v926_v47  ;;  %v2995_v4 = vadd.f32 %v2991_v57, %v3141_v20  ;;  %v3147_v20 = vld [vmem:[#allocation18_spill] sm:$0xff] }
 0x173   :  { %v2284_v43 = vpop.eup %2283  ;;  %1969 = vst [vmem:[#allocation8 + $0x38] sm:$0xff] %v1841_v62   ;;  %v1836_v5 = vpack.c.bf16 %v1155_v58, %v1154_v30  ;;  %2303 = vpow2.f32 %v990_v46  ;;  %v1160_v13 = vmul.f32 %v2282_v36, %v2863_v11  ;;  %v992_v59 = vmul.f32 1.442695, %v875_v18 }
 0x174   :  { %v2286_v37 = vpop.eup %2285  ;;  %1985 = vst [vmem:[#allocation8 + $0xb8] sm:$0xff] %v1921_v56   ;;  %v1916_v10 = vpack.c.bf16 %v1187_v61, %v1186_v14  ;;  %2305 = vpow2.f32 %v932_v50  ;;  %v2999_v47 = vadd.f32 %v2991_v57, %v3142_v63  ;;  %v1192_v11 = vmul.f32 %v2284_v43, %v2870_v51 }
 0x175   :  { %v2288_v22 = vpop.eup %2287  ;;  %1968 = vst [vmem:[#allocation8 + $0x30] sm:$0xff] %v1836_v5   ;;  %v1031_v24 = vadd.f32 1.0, %v2286_v37  ;;  %2307 = vpow2.f32 %v996_v27  ;;  %v1637_v12 = vclamps-f32 %v2995_v4, 30.0  ;;  %v3005_v42 = vadd.f32 %v2991_v57, %v3143_v19  ;;  %v3146_v5 = vld [vmem:[#allocation17_spill] sm:$0xff] }
 0x176   :  { %v2290_v45 = vpop.eup %2289  ;;  %1984 = vst [vmem:[#allocation8 + $0xb0] sm:$0xff] %v1916_v10   ;;  %2309 = vpow2.f32 %v928_v38  ;;  %v3008_v34 = vmul.f32 %v2288_v22, %v2885_v23  ;;  %v1669_v32 = vclamps-f32 %v2999_v47, 30.0  ;;  %v3013_v30 = vadd.f32 %v2991_v57, %v3144_v33 }
 0x177   :  { %v2292_v0 = vpop.eup %2291  ;;  %2311 = vrcp.f32 %v1031_v24  ;;  %v848_v39 = vsub.f32 0.0, %v1637_v12  ;;  %v1635_v7 = vclamps-f32 %v3005_v42, 30.0  ;;  %v3021_v49 = vadd.f32 %v2991_v57, %v3145_v48 }
 0x178   :  { %v2294_v46 = vpop.eup %2293  ;;  %v1161_v51 = vmul.f32 %v2292_v0, %v2904_v44  ;;  %2313 = vpow2.f32 %v992_v59  ;;  %v880_v53 = vsub.f32 0.0, %v1669_v32  ;;  %v1667_v23 = vclamps-f32 %v3013_v30, 30.0 }
 0x179   :  { %v2296_v14 = vpop.eup %2295  ;;  %v1193_v52 = vmul.f32 %v2294_v46, %v2922_v1  ;;  %v3024_v25 = vmul.f32 %v2290_v45, %v2894_v21  ;;  %v846_v27 = vsub.f32 0.0, %v1635_v7  ;;  %v938_v58 = vmul.f32 1.442695, %v848_v39  ;;  %v3148_v45 = vld [vmem:[#allocation19_spill] sm:$0xff] }
 0x17a   :  { %v2298_v50 = vpop.eup %2297  ;;  %v1851_v41 = vpack.c.bf16 %v1161_v51, %v1160_v13  ;;  %v1063_v44 = vadd.f32 1.0, %v2296_v14  ;;  %v1002_v31 = vmul.f32 1.442695, %v880_v53  ;;  %v878_v56 = vsub.f32 0.0, %v1667_v23 }
 0x17b   :  { %v2300_v35 = vpop.eup %2299  ;;  %v1931_v3 = vpack.c.bf16 %v1193_v52, %v1192_v11  ;;  %v1036_v62 = vadd.f32 1.0, %v2298_v50  ;;  %v1638_v61 = vclamps-f32 %v3021_v49, 30.0  ;;  %v934_v43 = vmul.f32 1.442695, %v846_v27 }
 0x17c   :  { %v2302_v1 = vpop.eup %2301  ;;  %1971 = vst [vmem:[#allocation8 + $0x48] sm:$0xff] %v1851_v41   ;;  %2315 = vrcp.f32 %v1063_v44  ;;  %v1068_v36 = vadd.f32 1.0, %v2300_v35  ;;  %v3029_v18 = vadd.f32 %v2991_v57, %v3146_v5  ;;  %v3033_v22 = vadd.f32 %v2991_v57, %v3147_v20 }
 0x17d   :  { %v2304_v38 = vpop.eup %2303  ;;  %1987 = vst [vmem:[#allocation8 + $0xc8] sm:$0xff] %v1931_v3   ;;  %2317 = vrcp.f32 %v1036_v62  ;;  %v1034_v21 = vadd.f32 1.0, %v2302_v1  ;;  %v849_v13 = vsub.f32 0.0, %v1638_v61  ;;  %v3038_v11 = vadd.f32 %v2991_v57, %v3148_v45  ;;  %v3149_v1 = vld [vmem:[#allocation20_spill] sm:$0xff] }
 0x17e   :  { %v2306_v37 = vpop.eup %2305  ;;  %2319 = vrcp.f32 %v1068_v36  ;;  %v1066_v10 = vadd.f32 1.0, %v2304_v38  ;;  %v1670_v63 = vclamps-f32 %v3029_v18, 30.0  ;;  %v998_v0 = vmul.f32 1.442695, %v878_v56 }
 0x17f   :  { %v2308_v24 = vpop.eup %2307  ;;  %2321 = vrcp.f32 %v1034_v21  ;;  %v1037_v59 = vadd.f32 1.0, %v2306_v37  ;;  %v1636_v32 = vclamps-f32 %v3033_v22, 30.0  ;;  %v1668_v39 = vclamps-f32 %v3038_v11, 30.0 }
 0x180   :  { %v2310_v12 = vpop.eup %2309  ;;  %2323 = vrcp.f32 %v1066_v10  ;;  %v1069_v19 = vadd.f32 1.0, %v2308_v24  ;;  %v881_v51 = vsub.f32 0.0, %v1670_v63  ;;  %v3045_v53 = vadd.f32 %v2991_v57, %v2874_v26 }
 0x181   :  { %v2312_v33 = vpop.eup %2311  ;;  %2325 = vrcp.f32 %v1037_v59  ;;  %v1035_v46 = vadd.f32 1.0, %v2310_v12  ;;  %v847_v52 = vsub.f32 0.0, %v1636_v32  ;;  %v940_v48 = vmul.f32 1.442695, %v849_v13 }
 0x182   :  { %v2314_v7 = vpop.eup %2313  ;;  %v1159_v14 = vmul.f32 %v2312_v33, %v2927_v8  ;;  %2327 = vrcp.f32 %v1069_v19  ;;  %v1004_v50 = vmul.f32 1.442695, %v881_v51  ;;  %v879_v44 = vsub.f32 0.0, %v1668_v39  ;;  %v3150_v39 = vld [vmem:[#allocation21_spill] sm:$0xff] }
 0x183   :  { %2329 = vrcp.f32 %v1035_v46  ;;  %v1067_v23 = vadd.f32 1.0, %v2314_v7  ;;  %v1641_v27 = vclamps-f32 %v3045_v53, 30.0  ;;  %v936_v35 = vmul.f32 1.442695, %v847_v52 }
 0x184   :  { %v1846_v41 = vpack.c.bf16 %v1159_v14, %v3008_v34  ;;  %2331 = vpow2.f32 %v938_v58  ;;  %v3051_v8 = vadd.f32 %v2991_v57, %v2876_v6  ;;  %v3055_v26 = vadd.f32 %v2991_v57, %v2879_v28 }
 0x185   :  { %2333 = vrcp.f32 %v1067_v23  ;;  %v852_v62 = vsub.f32 0.0, %v1641_v27  ;;  %v3059_v34 = vadd.f32 %v2991_v57, %v3149_v1  ;;  %v3063_v58 = vadd.f32 %v2991_v57, %v2887_v16 }
 0x186   :  { %v2316_v3 = vpop.eup %2315  ;;  %1970 = vst [vmem:[#allocation8 + $0x40] sm:$0xff] %v1846_v41   ;;  %2335 = vpow2.f32 %v1002_v31  ;;  %v1673_v56 = vclamps-f32 %v3051_v8, 30.0  ;;  %v1639_v28 = vclamps-f32 %v3055_v26, 30.0  ;;  %v1000_v31 = vmul.f32 1.442695, %v879_v44  ;;  %v3152_v41 = vld [vmem:[#allocation23_spill] sm:$0xff] }
 0x187   :  { %v2318_v36 = vpop.eup %2317  ;;  %v1191_v6 = vmul.f32 %v2316_v3, %v2936_v54  ;;  %2337 = vpow2.f32 %v934_v43  ;;  %v946_v5 = vmul.f32 1.442695, %v852_v62  ;;  %v1671_v20 = vclamps-f32 %v3059_v34, 30.0 }
 0x188   :  { %v2320_v61 = vpop.eup %2319  ;;  %2339 = vpow2.f32 %v998_v0  ;;  %v884_v37 = vsub.f32 0.0, %v1673_v56  ;;  %v1164_v16 = vmul.f32 %v2318_v36, %v2944_v9  ;;  %v850_v13 = vsub.f32 0.0, %v1639_v28 }
 0x189   :  { %v2322_v38 = vpop.eup %2321  ;;  %v1926_v21 = vpack.c.bf16 %v1191_v6, %v3024_v25  ;;  %2341 = vpow2.f32 %v940_v48  ;;  %v1642_v24 = vclamps-f32 %v3063_v58, 30.0  ;;  %v1196_v63 = vmul.f32 %v2320_v61, %v2948_v15  ;;  %v3151_v48 = vld [vmem:[#allocation22_spill] sm:$0xff] }
 0x18a   :  { %v2324_v10 = vpop.eup %2323  ;;  %2343 = vpow2.f32 %v1004_v50  ;;  %v1010_v43 = vmul.f32 1.442695, %v884_v37  ;;  %v942_v45 = vmul.f32 1.442695, %v850_v13  ;;  %v1162_v9 = vmul.f32 %v2322_v38, %v2954_v55 }
 0x18b   :  { %v2326_v54 = vpop.eup %2325  ;;  %1986 = vst [vmem:[#allocation8 + $0xc0] sm:$0xff] %v1926_v21   ;;  %2345 = vpow2.f32 %v936_v35  ;;  %v853_v0 = vsub.f32 0.0, %v1642_v24  ;;  %v1194_v33 = vmul.f32 %v2324_v10, %v2959_v60  ;;  %v3080_v15 = vadd.f32 %v2991_v57, %v3150_v39 }
 0x18c   :  { %v2328_v59 = vpop.eup %2327  ;;  %v1165_v25 = vmul.f32 %v2326_v54, %v2965_v2  ;;  %2347 = vpow2.f32 %v1000_v31  ;;  %v3085_v60 = vadd.f32 %v2991_v57, %v3151_v48  ;;  %v3089_v44 = vadd.f32 %v2991_v57, %v3152_v41 }
 0x18d   :  { %v2330_v12 = vpop.eup %2329  ;;  %v1197_v19 = vmul.f32 %v2328_v59, %v2969_v29  ;;  %2349 = vpow2.f32 %v946_v5  ;;  %v948_v52 = vmul.f32 1.442695, %v853_v0  ;;  %v882_v36 = vsub.f32 0.0, %v1671_v20 }
 0x18e   :  { %v2332_v32 = vpop.eup %2331  ;;  %v1861_v46 = vpack.c.bf16 %v1165_v25, %v1164_v16  ;;  %v1163_v51 = vmul.f32 %v2330_v12, %v2975_v40  ;;  %2351 = vpow2.f32 %v1010_v43  ;;  %v1640_v28 = vclamps-f32 %v3085_v60, 30.0 }
 0x18f   :  { %v2334_v2 = vpop.eup %2333  ;;  %v1941_v7 = vpack.c.bf16 %v1197_v19, %v1196_v63  ;;  %v1040_v14 = vadd.f32 1.0, %v2332_v32  ;;  %2353 = vpow2.f32 %v942_v45  ;;  %v1672_v31 = vclamps-f32 %v3089_v44, 30.0 }
 0x190   :  { %v2336_v55 = vpop.eup %2335  ;;  %1973 = vst [vmem:[#allocation8 + $0x58] sm:$0xff] %v1861_v46   ;;  %v1856_v29 = vpack.c.bf16 %v1163_v51, %v1162_v9  ;;  %v1195_v23 = vmul.f32 %v2334_v2, %v2983_v17  ;;  %v1674_v17 = vclamps-f32 %v3080_v15, 30.0  ;;  %v1006_v16 = vmul.f32 1.442695, %v882_v36 }
 0x191   :  { %v2338_v40 = vpop.eup %2337  ;;  %1989 = vst [vmem:[#allocation8 + $0xd8] sm:$0xff] %v1941_v7   ;;  %2355 = vrcp.f32 %v1040_v14  ;;  %v1072_v50 = vadd.f32 1.0, %v2336_v55  ;;  %v851_v13 = vsub.f32 0.0, %v1640_v28  ;;  %v883_v20 = vsub.f32 0.0, %v1672_v31 }
 0x192   :  { %v2340_v27 = vpop.eup %2339  ;;  %1972 = vst [vmem:[#allocation8 + $0x50] sm:$0xff] %v1856_v29   ;;  %v1936_v35 = vpack.c.bf16 %v1195_v23, %v1194_v33  ;;  %v1038_v3 = vadd.f32 1.0, %v2338_v40  ;;  %2357 = vpow2.f32 %v948_v52  ;;  %v885_v5 = vsub.f32 0.0, %v1674_v17 }
 0x193   :  { %v2342_v62 = vpop.eup %2341  ;;  %2359 = vrcp.f32 %v1072_v50  ;;  %v1070_v1 = vadd.f32 1.0, %v2340_v27  ;;  %v944_v45 = vmul.f32 1.442695, %v851_v13  ;;  %v1008_v19 = vmul.f32 1.442695, %v883_v20 }
 0x194   :  { %v2344_v6 = vpop.eup %2343  ;;  %1988 = vst [vmem:[#allocation8 + $0xd0] sm:$0xff] %v1936_v35   ;;  %2361 = vrcp.f32 %v1038_v3  ;;  %v1041_v56 = vadd.f32 1.0, %v2342_v62  ;;  %v1012_v59 = vmul.f32 1.442695, %v885_v5 }
 0x195   :  { %v2346_v61 = vpop.eup %2345  ;;  %2363 = vrcp.f32 %v1070_v1  ;;  %v1073_v57 = vadd.f32 1.0, %v2344_v6 }
 0x196   :  { %v2348_v38 = vpop.eup %2347  ;;  %2365 = vrcp.f32 %v1041_v56  ;;  %v1039_v21 = vadd.f32 1.0, %v2346_v61 }
 0x197   :  { %v2350_v37 = vpop.eup %2349  ;;  %2367 = vrcp.f32 %v1073_v57  ;;  %v1071_v10 = vadd.f32 1.0, %v2348_v38 }
 0x198   :  { %2369 = vrcp.f32 %v1039_v21  ;;  %v2352_v54 = vpop.eup %2351  ;;  %v1044_v43 = vadd.f32 1.0, %v2350_v37 }
 0x199   :  { %2371 = vrcp.f32 %v1071_v10  ;;  %v2354_v24 = vpop.eup %2353  ;;  %v1076_v41 = vadd.f32 1.0, %v2352_v54 }
 0x19a   :  { %2373 = vpow2.f32 %v1006_v16 }
 0x19b   :  { %v2356_v63 = vpop.eup %2355  ;;  %2375 = vrcp.f32 %v1044_v43 }
 0x19c   :  { %v2358_v25 = vpop.eup %2357  ;;  %2377 = vpow2.f32 %v1012_v59  ;;  %v1168_v51 = vmul.f32 %v2356_v63, %v2995_v4 }
 0x19d   :  { %v2360_v12 = vpop.eup %2359  ;;  %v1045_v9 = vadd.f32 1.0, %v2358_v25 }
 0x19e   :  { %v2362_v0 = vpop.eup %2361  ;;  %v1200_v7 = vmul.f32 %v2360_v12, %v2999_v47  ;;  %v1042_v47 = vadd.f32 1.0, %v2354_v24 }
 0x19f   :  { %v2364_v32 = vpop.eup %2363  ;;  %2379 = vrcp.f32 %v1045_v9  ;;  %v1166_v55 = vmul.f32 %v2362_v0, %v3005_v42 }
 0x1a0   :  { %v2366_v33 = vpop.eup %2365  ;;  %2381 = vpow2.f32 %v944_v45  ;;  %v1198_v48 = vmul.f32 %v2364_v32, %v3013_v30 }
 0x1a1   :  { %v2368_v46 = vpop.eup %2367  ;;  %v1169_v39 = vmul.f32 %v2366_v33, %v3021_v49  ;;  %2383 = vpow2.f32 %v1008_v19 }
 0x1a2   :  { %v2370_v2 = vpop.eup %2369  ;;  %v1201_v14 = vmul.f32 %v2368_v46, %v3029_v18  ;;  %2385 = vrcp.f32 %v1076_v41 }
 0x1a3   :  { %v2372_v52 = vpop.eup %2371  ;;  %v1871_v29 = vpack.c.bf16 %v1169_v39, %v1168_v51  ;;  %v1167_v23 = vmul.f32 %v2370_v2, %v3033_v22  ;;  %2387 = vrcp.f32 %v1042_v47 }
 0x1a4   :  { %v1951_v40 = vpack.c.bf16 %v1201_v14, %v1200_v7  ;;  %v1199_v50 = vmul.f32 %v2372_v52, %v3038_v11  ;;  %v2374_v4 = vpop.eup %2373 }
 0x1a5   :  { %1975 = vst [vmem:[#allocation8 + $0x68] sm:$0xff] %v1871_v29   ;;  %v1866_v49 = vpack.c.bf16 %v1167_v23, %v1166_v55  ;;  %v2376_v35 = vpop.eup %2375  ;;  %v1074_v42 = vadd.f32 1.0, %v2374_v4 }
 0x1a6   :  { %1991 = vst [vmem:[#allocation8 + $0xe8] sm:$0xff] %v1951_v40   ;;  %v1946_v27 = vpack.c.bf16 %v1199_v50, %v1198_v48  ;;  %v2378_v18 = vpop.eup %2377  ;;  %v1172_v30 = vmul.f32 %v2376_v35, %v3045_v53 }
 0x1a7   :  { %1974 = vst [vmem:[#allocation8 + $0x60] sm:$0xff] %v1866_v49   ;;  %v1077_v22 = vadd.f32 1.0, %v2378_v18 }
 0x1a8   :  { %1990 = vst [vmem:[#allocation8 + $0xe0] sm:$0xff] %v1946_v27  }
 0x1a9   :  { %v2380_v3 = vpop.eup %2379  ;;  %2389 = vrcp.f32 %v1077_v22 }
 0x1aa   :  { %v2382_v17 = vpop.eup %2381  ;;  %v1173_v11 = vmul.f32 %v2380_v3, %v3063_v58  ;;  %2391 = vrcp.f32 %v1074_v42 }
 0x1ab   :  { %v2384_v62 = vpop.eup %2383  ;;  %v1043_v1 = vadd.f32 1.0, %v2382_v17 }
 0x1ac   :  { %v1881_v36 = vpack.c.bf16 %v1173_v11, %v1172_v30  ;;  %v1075_v6 = vadd.f32 1.0, %v2384_v62  ;;  %v2386_v56 = vpop.eup %2385 }
 0x1ad   :  { %2393 = vrcp.f32 %v1043_v1  ;;  %v2388_v28 = vpop.eup %2387  ;;  %v1204_v31 = vmul.f32 %v2386_v56, %v3051_v8 }
 0x1ae   :  { %1977 = vst [vmem:[#allocation8 + $0x78] sm:$0xff] %v1881_v36   ;;  %2395 = vrcp.f32 %v1075_v6  ;;  %v1170_v58 = vmul.f32 %v2388_v28, %v3055_v26 }
 0x1b3   :  { %v2390_v61 = vpop.eup %2389 }
 0x1b4   :  { %v2392_v57 = vpop.eup %2391  ;;  %v1205_v53 = vmul.f32 %v2390_v61, %v3080_v15 }
 0x1b5   :  { %v1202_v10 = vmul.f32 %v2392_v57, %v3059_v34 }
 0x1b6   :  { %v1961_v5 = vpack.c.bf16 %v1205_v53, %v1204_v31 }
 0x1b7   :  { %v2394_v38 = vpop.eup %2393 }
 0x1b8   :  { %v2396_v21 = vpop.eup %2395  ;;  %v1171_v37 = vmul.f32 %v2394_v38, %v3085_v60  ;;  %1993 = vst [vmem:[#allocation8 + $0xf8] sm:$0xff] %v1961_v5  }
 0x1b9   :  { %v1203_v16 = vmul.f32 %v2396_v21, %v3089_v44 }
 0x1ba   :  { %v1876_v13 = vpack.c.bf16 %v1171_v37, %v1170_v58 }
 0x1bb   :  { %v1956_v54 = vpack.c.bf16 %v1203_v16, %v1202_v10 }
 0x1bc   :  { %1976 = vst [vmem:[#allocation8 + $0x70] sm:$0xff] %v1876_v13  }
 0x1bd   :  { %1992 = vst [vmem:[#allocation8 + $0xf0] sm:$0xff] %v1956_v54  }
 0x1be   :  { %2475 = shalt.err (!%p2472_p0)
}
 0x1bf   :  { %s2476_s28 = scalar_lea.hbm %s3128_s3, 4096 }
 0x1c0   :  { %p2477_p1 = scmp.ne.s32.totalorder %s3128_s3, %s2476_s28  ;;  %p2480_p2 = scmp.lt.u32.totalorder %s2476_s28, %s3128_s3 }
 0x1c2   :  { %p2482_p3 = pnand %p2480_p2, %p2477_p1 }
 0x1c4   :  { %2485 = shalt.err (!%p2482_p3)
}
 0x1c5   :  { %1537 = dma.vmem_to_hbm [thread:$0]  %s1532_s22, 4096, %s3128_s3, [#allocation4], %s2494_s24, %s2494_s24, %s2495_s25  }
 0x1c6   :  { %2490 = dma.done.wait [#allocation4], 4096  }
 0x1c7   :  { %2491 = vsyncadd [#allocation4], 4294963200 }
 0x1c8   :  { %1541 = vsyncpa [#allocation3], 1 }
 0x1c9   :  { %1542 = vsyncpa [#allocation6], 1 }
 0x1ca   :  { %1543 = vsyncpa [#allocation4], 1 }

</bundles_post_ra>
